<compile_context>
chip_gen: v7x
topology: tpu7x:2x2x1
jax: 0.10.0
libtpu: 0.0.40
codegen_flags: <defaults>
</compile_context>

<pallas_src>
import functools

import jax
import jax.numpy as jnp
from jax.experimental import pallas as pl
from jax.experimental.pallas import tpu as pltpu


def _round_up(x, m):
    return ((x + m - 1) // m) * m


def _sigmoid(x):
    # EUP-friendly sigmoid: one tanh instead of exp + VPU divide.
    return 0.5 * (jnp.tanh(0.5 * x) + 1.0)


def _decoder_kernel(x0_ref, h0_ref,
                    wlin_ref, blin_ref,
                    wih_ref, bih_ref,
                    whh_ref, bhh_ref,
                    wout_ref, bout_ref,
                    pred_ref, hT_ref):
    H = h0_ref.shape[1]
    D = x0_ref.shape[1]
    T = pred_ref.shape[1] // D

    # Hoist all weight loads out of the time loop; biases stay (1, ·) and are
    # broadcast implicitly by the VPU adds (no pre-broadcast vreg pressure).
    wlin = wlin_ref[...]          # (D, H)
    wih = wih_ref[...]            # (H, 3H)
    whh = whh_ref[...]            # (H, 3H)
    wout = wout_ref[...]          # (H, D)
    blin = blin_ref[...]          # (1, H)
    bih = bih_ref[...]            # (1, 3H)
    bhh = bhh_ref[...]            # (1, 3H)
    bout = bout_ref[...]          # (1, D)

    x = x0_ref[...]               # (NT, D)  decoder input
    h = h0_ref[...]               # (NT, H)  GRU hidden

    # pred_length is small & static -> fully unrolled recurrence in one kernel
    # invocation; the whole (NT, T*D) output block is written to HBM once.
    for t in range(T):
        # h-side gate matmul first: h is ready from the previous step, so this
        # overlaps the linear layer on the MXU instead of serializing after it.
        gh = jnp.dot(h, whh, preferred_element_type=jnp.float32) + bhh   # (NT, 3H)

        # relu(self.linear(x))
        g = jnp.maximum(
            jnp.dot(x, wlin, preferred_element_type=jnp.float32) + blin, 0.0)

        gi = jnp.dot(g, wih, preferred_element_type=jnp.float32) + bih   # (NT, 3H)

        # PyTorch GRU gate order (r, z, n); one sigmoid over the combined 2H slice.
        rz = _sigmoid(gi[:, 0:2 * H] + gh[:, 0:2 * H])
        r = rz[:, 0:H]
        z = rz[:, H:2 * H]
        n = jnp.tanh(gi[:, 2 * H:3 * H] + r * gh[:, 2 * H:3 * H])
        h = (1.0 - z) * n + z * h                                        # (NT, H)

        y = jnp.tanh(h)
        # TODO(synk): nn.Dropout(p=0.5) is treated as identity (eval / inference).
        out = jnp.dot(y, wout, preferred_element_type=jnp.float32) + bout  # (NT, D)

        pred_ref[:, t * D:(t + 1) * D] = out      # row-contiguous output layout
        x = out                                   # autoregressive feedback

    hT_ref[...] = h                               # final GRU hidden


def prepare_decoder_params(params):
    """One-time (model-load) weight prep: transposes + bias reshapes.

    No per-call work remains in the forward path.
    """
    H, D = params["w_lin"].shape
    return {
        "wlin": params["w_lin"].T.astype(jnp.float32),               # (D, H)
        "blin": params["b_lin"].reshape(1, H).astype(jnp.float32),
        "wih": params["w_ih"].T.astype(jnp.float32),                 # (H, 3H)
        "bih": params["b_ih"].reshape(1, 3 * H).astype(jnp.float32),
        "whh": params["w_hh"].T.astype(jnp.float32),                 # (H, 3H)
        "bhh": params["b_hh"].reshape(1, 3 * H).astype(jnp.float32),
        "wout": params["w_out"].T.astype(jnp.float32),               # (H, D)
        "bout": params["b_out"].reshape(1, D).astype(jnp.float32),
    }


def _choose_row_tile(n):
    n8 = _round_up(n, 8)
    if n8 >= 16:
        # >= 2 "parallel" grid steps so both v7x TensorCores get work;
        # harmless on v5e/v6e (single TC).
        return min(_round_up((n8 + 1) // 2, 8), 128)
    return n8


@functools.partial(jax.jit, static_argnames=("pred_length",))
def prediction_decoder_forward(last_state, hidden, prep, pred_length):
    """Pallas DecoderRNN rollout (teacher forcing off, eval-mode dropout)."""
    B, V, _, D = last_state.shape
    N = B * V
    H = prep["wlin"].shape[1]
    T = pred_length

    x0 = last_state.reshape(N, D).astype(jnp.float32)
    h0 = hidden.reshape(N, H).astype(jnp.float32)

    NT = _choose_row_tile(N)
    N_pad = _round_up(N, NT)
    if N_pad != N:
        x0 = jnp.pad(x0, ((0, N_pad - N), (0, 0)))
        h0 = jnp.pad(h0, ((0, N_pad - N), (0, 0)))

    grid = (N_pad // NT,)

    pred, hT = pl.pallas_call(
        _decoder_kernel,
        out_shape=(
            jax.ShapeDtypeStruct((N_pad, T * D), jnp.float32),
            jax.ShapeDtypeStruct((N_pad, H), jnp.float32),
        ),
        grid_spec=pltpu.PrefetchScalarGridSpec(
            num_scalar_prefetch=0,
            grid=grid,
            in_specs=[
                pl.BlockSpec((NT, D), lambda i: (i, 0)),          # x0
                pl.BlockSpec((NT, H), lambda i: (i, 0)),          # h0
                pl.BlockSpec((D, H), lambda i: (0, 0)),           # wlin
                pl.BlockSpec((1, H), lambda i: (0, 0)),           # blin
                pl.BlockSpec((H, 3 * H), lambda i: (0, 0)),       # wih
                pl.BlockSpec((1, 3 * H), lambda i: (0, 0)),       # bih
                pl.BlockSpec((H, 3 * H), lambda i: (0, 0)),       # whh
                pl.BlockSpec((1, 3 * H), lambda i: (0, 0)),       # bhh
                pl.BlockSpec((H, D), lambda i: (0, 0)),           # wout
                pl.BlockSpec((1, D), lambda i: (0, 0)),           # bout
            ],
            out_specs=(
                pl.BlockSpec((NT, T * D), lambda i: (i, 0)),      # pred (row-major)
                pl.BlockSpec((NT, H), lambda i: (i, 0)),          # final hidden
            ),
        ),
        compiler_params=pltpu.CompilerParams(
            dimension_semantics=("parallel",)),
    )(x0, h0, prep["wlin"], prep["blin"], prep["wih"], prep["bih"],
      prep["whh"], prep["bhh"], prep["wout"], prep["bout"])

    # (N, T*D) -> (B, V, T, D): pure reshape, no transpose; padded rows dropped.
    pred = pred[:N].reshape(B, V, T, D)
    hT = hT[:N].reshape(1, N, H)
    return pred, hT


def reference_forward(last_state, hidden, params, pred_length):
    """Pure-JAX reference mirroring the PyTorch module (eval mode, no teacher forcing)."""
    B, V, _, D = last_state.shape
    N = B * V
    H = params["w_lin"].shape[0]
    x = last_state.reshape(N, D)
    h = hidden.reshape(N, H)
    outs = []
    for _ in range(pred_length):
        g = jax.nn.relu(x @ params["w_lin"].T + params["b_lin"])
        gi = g @ params["w_ih"].T + params["b_ih"]
        gh = h @ params["w_hh"].T + params["b_hh"]
        r = jax.nn.sigmoid(gi[:, :H] + gh[:, :H])
        z = jax.nn.sigmoid(gi[:, H:2 * H] + gh[:, H:2 * H])
        n = jnp.tanh(gi[:, 2 * H:] + r * gh[:, 2 * H:])
        h = (1.0 - z) * n + z * h
        y = jnp.tanh(h)
        out = y @ params["w_out"].T + params["b_out"]
        outs.append(out)
        x = out
    pred = jnp.stack(outs, axis=0)                           # (T, N, D)
    return pred.transpose(1, 0, 2).reshape(B, V, pred_length, D), h.reshape(1, N, H)


if __name__ == "__main__":
    # Small shapes: batch=2, max_vehicle_num=4, obs_dim=4 (=input/output size),
    # hidden_size=32, num_layers=1, pred_length=8.
    B, V, D, H, T = 2, 4, 4, 32, 8

    key = jax.random.PRNGKey(0)
    ks = jax.random.split(key, 10)
    params = {
        "w_lin": 0.1 * jax.random.normal(ks[0], (H, D), jnp.float32),     # nn.Linear(input, hidden)
        "b_lin": 0.1 * jax.random.normal(ks[1], (H,), jnp.float32),
        "w_ih": 0.1 * jax.random.normal(ks[2], (3 * H, H), jnp.float32),  # GRU weight_ih_l0
        "b_ih": 0.1 * jax.random.normal(ks[3], (3 * H,), jnp.float32),
        "w_hh": 0.1 * jax.random.normal(ks[4], (3 * H, H), jnp.float32),  # GRU weight_hh_l0
        "b_hh": 0.1 * jax.random.normal(ks[5], (3 * H,), jnp.float32),
        "w_out": 0.1 * jax.random.normal(ks[6], (D, H), jnp.float32),     # nn.Linear(hidden, output)
        "b_out": 0.1 * jax.random.normal(ks[7], (D,), jnp.float32),
    }
    last_state = jax.random.normal(ks[8], (B, V, 1, D), jnp.float32)      # last observed state
    hidden = jax.random.normal(ks[9], (1, B * V, H), jnp.float32)         # GRU initial hidden

    prep = prepare_decoder_params(params)                                 # model-load time

    pred, h_final = prediction_decoder_forward(last_state, hidden, prep, T)
    pred = jax.block_until_ready(pred)
    h_final = jax.block_until_ready(h_final)

    ref_pred, ref_h = reference_forward(last_state, hidden, params, T)
    assert pred.shape == (B, V, T, D)
    assert h_final.shape == (1, B * V, H)
    assert jnp.allclose(pred, ref_pred, rtol=1e-4, atol=1e-4)
    assert jnp.allclose(h_final, ref_h, rtol=1e-4, atol=1e-4)

    print("KERNEL_OK")
</pallas_src>

<mosaic_0001>
module attributes {stable_mosaic.version = 11 : i64} {
  func.func @_decoder_kernel(%arg0: i32, %arg1: memref<8x4xf32, #tpu.memory_space<vmem>>, %arg2: memref<8x32xf32, #tpu.memory_space<vmem>>, %arg3: memref<4x32xf32, #tpu.memory_space<vmem>>, %arg4: memref<1x32xf32, #tpu.memory_space<vmem>>, %arg5: memref<32x96xf32, #tpu.memory_space<vmem>>, %arg6: memref<1x96xf32, #tpu.memory_space<vmem>>, %arg7: memref<32x96xf32, #tpu.memory_space<vmem>>, %arg8: memref<1x96xf32, #tpu.memory_space<vmem>>, %arg9: memref<32x4xf32, #tpu.memory_space<vmem>>, %arg10: memref<1x4xf32, #tpu.memory_space<vmem>>, %arg11: memref<8x32xf32, #tpu.memory_space<vmem>>, %arg12: memref<8x32xf32, #tpu.memory_space<vmem>>) attributes {dimension_semantics = [#tpu.dimension_semantics<parallel>], iteration_bounds = array<i64: 1>, scalar_prefetch = 0 : i64, scratch_operands = 0 : i64, tpu.core_type = #tpu.core_type<tc>, window_params = [{transform_indices = @transform_0, window_bounds = array<i64: 8, 4>}, {transform_indices = @transform_1, window_bounds = array<i64: 8, 32>}, {pipeline_mode = #tpu.pipeline_mode<synchronous>, transform_indices = @transform_2, window_bounds = array<i64: 4, 32>}, {pipeline_mode = #tpu.pipeline_mode<synchronous>, transform_indices = @transform_3, window_bounds = array<i64: 1, 32>}, {pipeline_mode = #tpu.pipeline_mode<synchronous>, transform_indices = @transform_4, window_bounds = array<i64: 32, 96>}, {pipeline_mode = #tpu.pipeline_mode<synchronous>, transform_indices = @transform_5, window_bounds = array<i64: 1, 96>}, {pipeline_mode = #tpu.pipeline_mode<synchronous>, transform_indices = @transform_6, window_bounds = array<i64: 32, 96>}, {pipeline_mode = #tpu.pipeline_mode<synchronous>, transform_indices = @transform_7, window_bounds = array<i64: 1, 96>}, {pipeline_mode = #tpu.pipeline_mode<synchronous>, transform_indices = @transform_8, window_bounds = array<i64: 32, 4>}, {pipeline_mode = #tpu.pipeline_mode<synchronous>, transform_indices = @transform_9, window_bounds = array<i64: 1, 4>}, {transform_indices = @transform_10, window_bounds = array<i64: 8, 32>}, {transform_indices = @transform_11, window_bounds = array<i64: 8, 32>}]} {
    %c0 = arith.constant 0 : index
    %c0_0 = arith.constant 0 : index
    %0 = vector.load %arg3[%c0, %c0_0] : memref<4x32xf32, #tpu.memory_space<vmem>>, vector<4x32xf32>
    %c0_1 = arith.constant 0 : index
    %c0_2 = arith.constant 0 : index
    %1 = vector.load %arg5[%c0_1, %c0_2] : memref<32x96xf32, #tpu.memory_space<vmem>>, vector<32x96xf32>
    %c0_3 = arith.constant 0 : index
    %c0_4 = arith.constant 0 : index
    %2 = vector.load %arg7[%c0_3, %c0_4] : memref<32x96xf32, #tpu.memory_space<vmem>>, vector<32x96xf32>
    %c0_5 = arith.constant 0 : index
    %c0_6 = arith.constant 0 : index
    %3 = vector.load %arg9[%c0_5, %c0_6] : memref<32x4xf32, #tpu.memory_space<vmem>>, vector<32x4xf32>
    %c0_7 = arith.constant 0 : index
    %c0_8 = arith.constant 0 : index
    %4 = vector.load %arg4[%c0_7, %c0_8] : memref<1x32xf32, #tpu.memory_space<vmem>>, vector<1x32xf32>
    %c0_9 = arith.constant 0 : index
    %c0_10 = arith.constant 0 : index
    %5 = vector.load %arg6[%c0_9, %c0_10] : memref<1x96xf32, #tpu.memory_space<vmem>>, vector<1x96xf32>
    %c0_11 = arith.constant 0 : index
    %c0_12 = arith.constant 0 : index
    %6 = vector.load %arg8[%c0_11, %c0_12] : memref<1x96xf32, #tpu.memory_space<vmem>>, vector<1x96xf32>
    %c0_13 = arith.constant 0 : index
    %c0_14 = arith.constant 0 : index
    %7 = vector.load %arg10[%c0_13, %c0_14] : memref<1x4xf32, #tpu.memory_space<vmem>>, vector<1x4xf32>
    %c0_15 = arith.constant 0 : index
    %c0_16 = arith.constant 0 : index
    %8 = vector.load %arg1[%c0_15, %c0_16] : memref<8x4xf32, #tpu.memory_space<vmem>>, vector<8x4xf32>
    %c0_17 = arith.constant 0 : index
    %c0_18 = arith.constant 0 : index
    %9 = vector.load %arg2[%c0_17, %c0_18] : memref<8x32xf32, #tpu.memory_space<vmem>>, vector<8x32xf32>
    %cst = arith.constant dense<0.000000e+00> : vector<8x96xf32>
    %10 = tpu.matmul %9, %2, %cst {dimension_numbers = #tpu.dot_dimension_numbers<[1], [0], [0], [1], [0, 0, 1, 1], [], []>} : vector<8x32xf32>, vector<32x96xf32>, vector<8x96xf32> -> vector<8x96xf32>
    %11 = vector.broadcast %6 : vector<1x96xf32> to vector<8x96xf32>
    %12 = arith.addf %10, %11 : vector<8x96xf32>
    %cst_19 = arith.constant dense<0.000000e+00> : vector<8x32xf32>
    %13 = tpu.matmul %8, %0, %cst_19 {dimension_numbers = #tpu.dot_dimension_numbers<[1], [0], [0], [1], [0, 0, 1, 1], [], []>} : vector<8x4xf32>, vector<4x32xf32>, vector<8x32xf32> -> vector<8x32xf32>
    %14 = vector.broadcast %4 : vector<1x32xf32> to vector<8x32xf32>
    %15 = arith.addf %13, %14 : vector<8x32xf32>
    %cst_20 = arith.constant 0.000000e+00 : f32
    %16 = vector.broadcast %cst_20 : f32 to vector<8x32xf32>
    %17 = arith.maximumf %15, %16 : vector<8x32xf32>
    %cst_21 = arith.constant dense<0.000000e+00> : vector<8x96xf32>
    %18 = tpu.matmul %17, %1, %cst_21 {dimension_numbers = #tpu.dot_dimension_numbers<[1], [0], [0], [1], [0, 0, 1, 1], [], []>} : vector<8x32xf32>, vector<32x96xf32>, vector<8x96xf32> -> vector<8x96xf32>
    %19 = vector.broadcast %5 : vector<1x96xf32> to vector<8x96xf32>
    %20 = arith.addf %18, %19 : vector<8x96xf32>
    %21 = vector.extract_strided_slice %20 {offsets = [0, 0], sizes = [8, 64], strides = [1, 1]} : vector<8x96xf32> to vector<8x64xf32>
    %22 = vector.extract_strided_slice %12 {offsets = [0, 0], sizes = [8, 64], strides = [1, 1]} : vector<8x96xf32> to vector<8x64xf32>
    %23 = arith.addf %21, %22 : vector<8x64xf32>
    %cst_22 = arith.constant 5.000000e-01 : f32
    %24 = vector.broadcast %cst_22 : f32 to vector<8x64xf32>
    %25 = arith.mulf %24, %23 : vector<8x64xf32>
    %26 = math.tanh %25 : vector<8x64xf32>
    %cst_23 = arith.constant 1.000000e+00 : f32
    %27 = vector.broadcast %cst_23 : f32 to vector<8x64xf32>
    %28 = arith.addf %26, %27 : vector<8x64xf32>
    %cst_24 = arith.constant 5.000000e-01 : f32
    %29 = vector.broadcast %cst_24 : f32 to vector<8x64xf32>
    %30 = arith.mulf %29, %28 : vector<8x64xf32>
    %31 = vector.extract_strided_slice %30 {offsets = [0, 0], sizes = [8, 32], strides = [1, 1]} : vector<8x64xf32> to vector<8x32xf32>
    %32 = vector.extract_strided_slice %30 {offsets = [0, 32], sizes = [8, 32], strides = [1, 1]} : vector<8x64xf32> to vector<8x32xf32>
    %33 = vector.extract_strided_slice %20 {offsets = [0, 64], sizes = [8, 32], strides = [1, 1]} : vector<8x96xf32> to vector<8x32xf32>
    %34 = vector.extract_strided_slice %12 {offsets = [0, 64], sizes = [8, 32], strides = [1, 1]} : vector<8x96xf32> to vector<8x32xf32>
    %35 = arith.mulf %31, %34 : vector<8x32xf32>
    %36 = arith.addf %33, %35 : vector<8x32xf32>
    %37 = math.tanh %36 : vector<8x32xf32>
    %cst_25 = arith.constant 1.000000e+00 : f32
    %38 = vector.broadcast %cst_25 : f32 to vector<8x32xf32>
    %39 = arith.subf %38, %32 : vector<8x32xf32>
    %40 = arith.mulf %39, %37 : vector<8x32xf32>
    %41 = arith.mulf %32, %9 : vector<8x32xf32>
    %42 = arith.addf %40, %41 : vector<8x32xf32>
    %43 = math.tanh %42 : vector<8x32xf32>
    %cst_26 = arith.constant dense<0.000000e+00> : vector<8x4xf32>
    %44 = tpu.matmul %43, %3, %cst_26 {dimension_numbers = #tpu.dot_dimension_numbers<[1], [0], [0], [1], [0, 0, 1, 1], [], []>} : vector<8x32xf32>, vector<32x4xf32>, vector<8x4xf32> -> vector<8x4xf32>
    %45 = vector.broadcast %7 : vector<1x4xf32> to vector<8x4xf32>
    %46 = arith.addf %44, %45 : vector<8x4xf32>
    %c0_27 = arith.constant 0 : index
    %c0_28 = arith.constant 0 : index
    %47 = vector.load %arg11[%c0_27, %c0_28] : memref<8x32xf32, #tpu.memory_space<vmem>>, vector<8x4xf32>
    tpu.vector_store %arg11[%c0_27, %c0_28], %46 {strides = array<i32>} : memref<8x32xf32, #tpu.memory_space<vmem>>, vector<8x4xf32>,
    %cst_29 = arith.constant dense<0.000000e+00> : vector<8x96xf32>
    %48 = tpu.matmul %42, %2, %cst_29 {dimension_numbers = #tpu.dot_dimension_numbers<[1], [0], [0], [1], [0, 0, 1, 1], [], []>} : vector<8x32xf32>, vector<32x96xf32>, vector<8x96xf32> -> vector<8x96xf32>
    %49 = vector.broadcast %6 : vector<1x96xf32> to vector<8x96xf32>
    %50 = arith.addf %48, %49 : vector<8x96xf32>
    %cst_30 = arith.constant dense<0.000000e+00> : vector<8x32xf32>
    %51 = tpu.matmul %46, %0, %cst_30 {dimension_numbers = #tpu.dot_dimension_numbers<[1], [0], [0], [1], [0, 0, 1, 1], [], []>} : vector<8x4xf32>, vector<4x32xf32>, vector<8x32xf32> -> vector<8x32xf32>
    %52 = vector.broadcast %4 : vector<1x32xf32> to vector<8x32xf32>
    %53 = arith.addf %51, %52 : vector<8x32xf32>
    %cst_31 = arith.constant 0.000000e+00 : f32
    %54 = vector.broadcast %cst_31 : f32 to vector<8x32xf32>
    %55 = arith.maximumf %53, %54 : vector<8x32xf32>
    %cst_32 = arith.constant dense<0.000000e+00> : vector<8x96xf32>
    %56 = tpu.matmul %55, %1, %cst_32 {dimension_numbers = #tpu.dot_dimension_numbers<[1], [0], [0], [1], [0, 0, 1, 1], [], []>} : vector<8x32xf32>, vector<32x96xf32>, vector<8x96xf32> -> vector<8x96xf32>
    %57 = vector.broadcast %5 : vector<1x96xf32> to vector<8x96xf32>
    %58 = arith.addf %56, %57 : vector<8x96xf32>
    %59 = vector.extract_strided_slice %58 {offsets = [0, 0], sizes = [8, 64], strides = [1, 1]} : vector<8x96xf32> to vector<8x64xf32>
    %60 = vector.extract_strided_slice %50 {offsets = [0, 0], sizes = [8, 64], strides = [1, 1]} : vector<8x96xf32> to vector<8x64xf32>
    %61 = arith.addf %59, %60 : vector<8x64xf32>
    %cst_33 = arith.constant 5.000000e-01 : f32
    %62 = vector.broadcast %cst_33 : f32 to vector<8x64xf32>
    %63 = arith.mulf %62, %61 : vector<8x64xf32>
    %64 = math.tanh %63 : vector<8x64xf32>
    %cst_34 = arith.constant 1.000000e+00 : f32
    %65 = vector.broadcast %cst_34 : f32 to vector<8x64xf32>
    %66 = arith.addf %64, %65 : vector<8x64xf32>
    %cst_35 = arith.constant 5.000000e-01 : f32
    %67 = vector.broadcast %cst_35 : f32 to vector<8x64xf32>
    %68 = arith.mulf %67, %66 : vector<8x64xf32>
    %69 = vector.extract_strided_slice %68 {offsets = [0, 0], sizes = [8, 32], strides = [1, 1]} : vector<8x64xf32> to vector<8x32xf32>
    %70 = vector.extract_strided_slice %68 {offsets = [0, 32], sizes = [8, 32], strides = [1, 1]} : vector<8x64xf32> to vector<8x32xf32>
    %71 = vector.extract_strided_slice %58 {offsets = [0, 64], sizes = [8, 32], strides = [1, 1]} : vector<8x96xf32> to vector<8x32xf32>
    %72 = vector.extract_strided_slice %50 {offsets = [0, 64], sizes = [8, 32], strides = [1, 1]} : vector<8x96xf32> to vector<8x32xf32>
    %73 = arith.mulf %69, %72 : vector<8x32xf32>
    %74 = arith.addf %71, %73 : vector<8x32xf32>
    %75 = math.tanh %74 : vector<8x32xf32>
    %cst_36 = arith.constant 1.000000e+00 : f32
    %76 = vector.broadcast %cst_36 : f32 to vector<8x32xf32>
    %77 = arith.subf %76, %70 : vector<8x32xf32>
    %78 = arith.mulf %77, %75 : vector<8x32xf32>
    %79 = arith.mulf %70, %42 : vector<8x32xf32>
    %80 = arith.addf %78, %79 : vector<8x32xf32>
    %81 = math.tanh %80 : vector<8x32xf32>
    %cst_37 = arith.constant dense<0.000000e+00> : vector<8x4xf32>
    %82 = tpu.matmul %81, %3, %cst_37 {dimension_numbers = #tpu.dot_dimension_numbers<[1], [0], [0], [1], [0, 0, 1, 1], [], []>} : vector<8x32xf32>, vector<32x4xf32>, vector<8x4xf32> -> vector<8x4xf32>
    %83 = vector.broadcast %7 : vector<1x4xf32> to vector<8x4xf32>
    %84 = arith.addf %82, %83 : vector<8x4xf32>
    %c0_38 = arith.constant 0 : index
    %c4 = arith.constant 4 : index
    %85 = vector.load %arg11[%c0_38, %c4] : memref<8x32xf32, #tpu.memory_space<vmem>>, vector<8x4xf32>
    tpu.vector_store %arg11[%c0_38, %c4], %84 {strides = array<i32>} : memref<8x32xf32, #tpu.memory_space<vmem>>, vector<8x4xf32>,
    %cst_39 = arith.constant dense<0.000000e+00> : vector<8x96xf32>
    %86 = tpu.matmul %80, %2, %cst_39 {dimension_numbers = #tpu.dot_dimension_numbers<[1], [0], [0], [1], [0, 0, 1, 1], [], []>} : vector<8x32xf32>, vector<32x96xf32>, vector<8x96xf32> -> vector<8x96xf32>
    %87 = vector.broadcast %6 : vector<1x96xf32> to vector<8x96xf32>
    %88 = arith.addf %86, %87 : vector<8x96xf32>
    %cst_40 = arith.constant dense<0.000000e+00> : vector<8x32xf32>
    %89 = tpu.matmul %84, %0, %cst_40 {dimension_numbers = #tpu.dot_dimension_numbers<[1], [0], [0], [1], [0, 0, 1, 1], [], []>} : vector<8x4xf32>, vector<4x32xf32>, vector<8x32xf32> -> vector<8x32xf32>
    %90 = vector.broadcast %4 : vector<1x32xf32> to vector<8x32xf32>
    %91 = arith.addf %89, %90 : vector<8x32xf32>
    %cst_41 = arith.constant 0.000000e+00 : f32
    %92 = vector.broadcast %cst_41 : f32 to vector<8x32xf32>
    %93 = arith.maximumf %91, %92 : vector<8x32xf32>
    %cst_42 = arith.constant dense<0.000000e+00> : vector<8x96xf32>
    %94 = tpu.matmul %93, %1, %cst_42 {dimension_numbers = #tpu.dot_dimension_numbers<[1], [0], [0], [1], [0, 0, 1, 1], [], []>} : vector<8x32xf32>, vector<32x96xf32>, vector<8x96xf32> -> vector<8x96xf32>
    %95 = vector.broadcast %5 : vector<1x96xf32> to vector<8x96xf32>
    %96 = arith.addf %94, %95 : vector<8x96xf32>
    %97 = vector.extract_strided_slice %96 {offsets = [0, 0], sizes = [8, 64], strides = [1, 1]} : vector<8x96xf32> to vector<8x64xf32>
    %98 = vector.extract_strided_slice %88 {offsets = [0, 0], sizes = [8, 64], strides = [1, 1]} : vector<8x96xf32> to vector<8x64xf32>
    %99 = arith.addf %97, %98 : vector<8x64xf32>
    %cst_43 = arith.constant 5.000000e-01 : f32
    %100 = vector.broadcast %cst_43 : f32 to vector<8x64xf32>
    %101 = arith.mulf %100, %99 : vector<8x64xf32>
    %102 = math.tanh %101 : vector<8x64xf32>
    %cst_44 = arith.constant 1.000000e+00 : f32
    %103 = vector.broadcast %cst_44 : f32 to vector<8x64xf32>
    %104 = arith.addf %102, %103 : vector<8x64xf32>
    %cst_45 = arith.constant 5.000000e-01 : f32
    %105 = vector.broadcast %cst_45 : f32 to vector<8x64xf32>
    %106 = arith.mulf %105, %104 : vector<8x64xf32>
    %107 = vector.extract_strided_slice %106 {offsets = [0, 0], sizes = [8, 32], strides = [1, 1]} : vector<8x64xf32> to vector<8x32xf32>
    %108 = vector.extract_strided_slice %106 {offsets = [0, 32], sizes = [8, 32], strides = [1, 1]} : vector<8x64xf32> to vector<8x32xf32>
    %109 = vector.extract_strided_slice %96 {offsets = [0, 64], sizes = [8, 32], strides = [1, 1]} : vector<8x96xf32> to vector<8x32xf32>
    %110 = vector.extract_strided_slice %88 {offsets = [0, 64], sizes = [8, 32], strides = [1, 1]} : vector<8x96xf32> to vector<8x32xf32>
    %111 = arith.mulf %107, %110 : vector<8x32xf32>
    %112 = arith.addf %109, %111 : vector<8x32xf32>
    %113 = math.tanh %112 : vector<8x32xf32>
    %cst_46 = arith.constant 1.000000e+00 : f32
    %114 = vector.broadcast %cst_46 : f32 to vector<8x32xf32>
    %115 = arith.subf %114, %108 : vector<8x32xf32>
    %116 = arith.mulf %115, %113 : vector<8x32xf32>
    %117 = arith.mulf %108, %80 : vector<8x32xf32>
    %118 = arith.addf %116, %117 : vector<8x32xf32>
    %119 = math.tanh %118 : vector<8x32xf32>
    %cst_47 = arith.constant dense<0.000000e+00> : vector<8x4xf32>
    %120 = tpu.matmul %119, %3, %cst_47 {dimension_numbers = #tpu.dot_dimension_numbers<[1], [0], [0], [1], [0, 0, 1, 1], [], []>} : vector<8x32xf32>, vector<32x4xf32>, vector<8x4xf32> -> vector<8x4xf32>
    %121 = vector.broadcast %7 : vector<1x4xf32> to vector<8x4xf32>
    %122 = arith.addf %120, %121 : vector<8x4xf32>
    %c0_48 = arith.constant 0 : index
    %c8 = arith.constant 8 : index
    %123 = vector.load %arg11[%c0_48, %c8] : memref<8x32xf32, #tpu.memory_space<vmem>>, vector<8x4xf32>
    tpu.vector_store %arg11[%c0_48, %c8], %122 {strides = array<i32>} : memref<8x32xf32, #tpu.memory_space<vmem>>, vector<8x4xf32>,
    %cst_49 = arith.constant dense<0.000000e+00> : vector<8x96xf32>
    %124 = tpu.matmul %118, %2, %cst_49 {dimension_numbers = #tpu.dot_dimension_numbers<[1], [0], [0], [1], [0, 0, 1, 1], [], []>} : vector<8x32xf32>, vector<32x96xf32>, vector<8x96xf32> -> vector<8x96xf32>
    %125 = vector.broadcast %6 : vector<1x96xf32> to vector<8x96xf32>
    %126 = arith.addf %124, %125 : vector<8x96xf32>
    %cst_50 = arith.constant dense<0.000000e+00> : vector<8x32xf32>
    %127 = tpu.matmul %122, %0, %cst_50 {dimension_numbers = #tpu.dot_dimension_numbers<[1], [0], [0], [1], [0, 0, 1, 1], [], []>} : vector<8x4xf32>, vector<4x32xf32>, vector<8x32xf32> -> vector<8x32xf32>
    %128 = vector.broadcast %4 : vector<1x32xf32> to vector<8x32xf32>
    %129 = arith.addf %127, %128 : vector<8x32xf32>
    %cst_51 = arith.constant 0.000000e+00 : f32
    %130 = vector.broadcast %cst_51 : f32 to vector<8x32xf32>
    %131 = arith.maximumf %129, %130 : vector<8x32xf32>
    %cst_52 = arith.constant dense<0.000000e+00> : vector<8x96xf32>
    %132 = tpu.matmul %131, %1, %cst_52 {dimension_numbers = #tpu.dot_dimension_numbers<[1], [0], [0], [1], [0, 0, 1, 1], [], []>} : vector<8x32xf32>, vector<32x96xf32>, vector<8x96xf32> -> vector<8x96xf32>
    %133 = vector.broadcast %5 : vector<1x96xf32> to vector<8x96xf32>
    %134 = arith.addf %132, %133 : vector<8x96xf32>
    %135 = vector.extract_strided_slice %134 {offsets = [0, 0], sizes = [8, 64], strides = [1, 1]} : vector<8x96xf32> to vector<8x64xf32>
    %136 = vector.extract_strided_slice %126 {offsets = [0, 0], sizes = [8, 64], strides = [1, 1]} : vector<8x96xf32> to vector<8x64xf32>
    %137 = arith.addf %135, %136 : vector<8x64xf32>
    %cst_53 = arith.constant 5.000000e-01 : f32
    %138 = vector.broadcast %cst_53 : f32 to vector<8x64xf32>
    %139 = arith.mulf %138, %137 : vector<8x64xf32>
    %140 = math.tanh %139 : vector<8x64xf32>
    %cst_54 = arith.constant 1.000000e+00 : f32
    %141 = vector.broadcast %cst_54 : f32 to vector<8x64xf32>
    %142 = arith.addf %140, %141 : vector<8x64xf32>
    %cst_55 = arith.constant 5.000000e-01 : f32
    %143 = vector.broadcast %cst_55 : f32 to vector<8x64xf32>
    %144 = arith.mulf %143, %142 : vector<8x64xf32>
    %145 = vector.extract_strided_slice %144 {offsets = [0, 0], sizes = [8, 32], strides = [1, 1]} : vector<8x64xf32> to vector<8x32xf32>
    %146 = vector.extract_strided_slice %144 {offsets = [0, 32], sizes = [8, 32], strides = [1, 1]} : vector<8x64xf32> to vector<8x32xf32>
    %147 = vector.extract_strided_slice %134 {offsets = [0, 64], sizes = [8, 32], strides = [1, 1]} : vector<8x96xf32> to vector<8x32xf32>
    %148 = vector.extract_strided_slice %126 {offsets = [0, 64], sizes = [8, 32], strides = [1, 1]} : vector<8x96xf32> to vector<8x32xf32>
    %149 = arith.mulf %145, %148 : vector<8x32xf32>
    %150 = arith.addf %147, %149 : vector<8x32xf32>
    %151 = math.tanh %150 : vector<8x32xf32>
    %cst_56 = arith.constant 1.000000e+00 : f32
    %152 = vector.broadcast %cst_56 : f32 to vector<8x32xf32>
    %153 = arith.subf %152, %146 : vector<8x32xf32>
    %154 = arith.mulf %153, %151 : vector<8x32xf32>
    %155 = arith.mulf %146, %118 : vector<8x32xf32>
    %156 = arith.addf %154, %155 : vector<8x32xf32>
    %157 = math.tanh %156 : vector<8x32xf32>
    %cst_57 = arith.constant dense<0.000000e+00> : vector<8x4xf32>
    %158 = tpu.matmul %157, %3, %cst_57 {dimension_numbers = #tpu.dot_dimension_numbers<[1], [0], [0], [1], [0, 0, 1, 1], [], []>} : vector<8x32xf32>, vector<32x4xf32>, vector<8x4xf32> -> vector<8x4xf32>
    %159 = vector.broadcast %7 : vector<1x4xf32> to vector<8x4xf32>
    %160 = arith.addf %158, %159 : vector<8x4xf32>
    %c0_58 = arith.constant 0 : index
    %c12 = arith.constant 12 : index
    %161 = vector.load %arg11[%c0_58, %c12] : memref<8x32xf32, #tpu.memory_space<vmem>>, vector<8x4xf32>
    tpu.vector_store %arg11[%c0_58, %c12], %160 {strides = array<i32>} : memref<8x32xf32, #tpu.memory_space<vmem>>, vector<8x4xf32>,
    %cst_59 = arith.constant dense<0.000000e+00> : vector<8x96xf32>
    %162 = tpu.matmul %156, %2, %cst_59 {dimension_numbers = #tpu.dot_dimension_numbers<[1], [0], [0], [1], [0, 0, 1, 1], [], []>} : vector<8x32xf32>, vector<32x96xf32>, vector<8x96xf32> -> vector<8x96xf32>
    %163 = vector.broadcast %6 : vector<1x96xf32> to vector<8x96xf32>
    %164 = arith.addf %162, %163 : vector<8x96xf32>
    %cst_60 = arith.constant dense<0.000000e+00> : vector<8x32xf32>
    %165 = tpu.matmul %160, %0, %cst_60 {dimension_numbers = #tpu.dot_dimension_numbers<[1], [0], [0], [1], [0, 0, 1, 1], [], []>} : vector<8x4xf32>, vector<4x32xf32>, vector<8x32xf32> -> vector<8x32xf32>
    %166 = vector.broadcast %4 : vector<1x32xf32> to vector<8x32xf32>
    %167 = arith.addf %165, %166 : vector<8x32xf32>
    %cst_61 = arith.constant 0.000000e+00 : f32
    %168 = vector.broadcast %cst_61 : f32 to vector<8x32xf32>
    %169 = arith.maximumf %167, %168 : vector<8x32xf32>
    %cst_62 = arith.constant dense<0.000000e+00> : vector<8x96xf32>
    %170 = tpu.matmul %169, %1, %cst_62 {dimension_numbers = #tpu.dot_dimension_numbers<[1], [0], [0], [1], [0, 0, 1, 1], [], []>} : vector<8x32xf32>, vector<32x96xf32>, vector<8x96xf32> -> vector<8x96xf32>
    %171 = vector.broadcast %5 : vector<1x96xf32> to vector<8x96xf32>
    %172 = arith.addf %170, %171 : vector<8x96xf32>
    %173 = vector.extract_strided_slice %172 {offsets = [0, 0], sizes = [8, 64], strides = [1, 1]} : vector<8x96xf32> to vector<8x64xf32>
    %174 = vector.extract_strided_slice %164 {offsets = [0, 0], sizes = [8, 64], strides = [1, 1]} : vector<8x96xf32> to vector<8x64xf32>
    %175 = arith.addf %173, %174 : vector<8x64xf32>
    %cst_63 = arith.constant 5.000000e-01 : f32
    %176 = vector.broadcast %cst_63 : f32 to vector<8x64xf32>
    %177 = arith.mulf %176, %175 : vector<8x64xf32>
    %178 = math.tanh %177 : vector<8x64xf32>
    %cst_64 = arith.constant 1.000000e+00 : f32
    %179 = vector.broadcast %cst_64 : f32 to vector<8x64xf32>
    %180 = arith.addf %178, %179 : vector<8x64xf32>
    %cst_65 = arith.constant 5.000000e-01 : f32
    %181 = vector.broadcast %cst_65 : f32 to vector<8x64xf32>
    %182 = arith.mulf %181, %180 : vector<8x64xf32>
    %183 = vector.extract_strided_slice %182 {offsets = [0, 0], sizes = [8, 32], strides = [1, 1]} : vector<8x64xf32> to vector<8x32xf32>
    %184 = vector.extract_strided_slice %182 {offsets = [0, 32], sizes = [8, 32], strides = [1, 1]} : vector<8x64xf32> to vector<8x32xf32>
    %185 = vector.extract_strided_slice %172 {offsets = [0, 64], sizes = [8, 32], strides = [1, 1]} : vector<8x96xf32> to vector<8x32xf32>
    %186 = vector.extract_strided_slice %164 {offsets = [0, 64], sizes = [8, 32], strides = [1, 1]} : vector<8x96xf32> to vector<8x32xf32>
    %187 = arith.mulf %183, %186 : vector<8x32xf32>
    %188 = arith.addf %185, %187 : vector<8x32xf32>
    %189 = math.tanh %188 : vector<8x32xf32>
    %cst_66 = arith.constant 1.000000e+00 : f32
    %190 = vector.broadcast %cst_66 : f32 to vector<8x32xf32>
    %191 = arith.subf %190, %184 : vector<8x32xf32>
    %192 = arith.mulf %191, %189 : vector<8x32xf32>
    %193 = arith.mulf %184, %156 : vector<8x32xf32>
    %194 = arith.addf %192, %193 : vector<8x32xf32>
    %195 = math.tanh %194 : vector<8x32xf32>
    %cst_67 = arith.constant dense<0.000000e+00> : vector<8x4xf32>
    %196 = tpu.matmul %195, %3, %cst_67 {dimension_numbers = #tpu.dot_dimension_numbers<[1], [0], [0], [1], [0, 0, 1, 1], [], []>} : vector<8x32xf32>, vector<32x4xf32>, vector<8x4xf32> -> vector<8x4xf32>
    %197 = vector.broadcast %7 : vector<1x4xf32> to vector<8x4xf32>
    %198 = arith.addf %196, %197 : vector<8x4xf32>
    %c0_68 = arith.constant 0 : index
    %c16 = arith.constant 16 : index
    %199 = vector.load %arg11[%c0_68, %c16] : memref<8x32xf32, #tpu.memory_space<vmem>>, vector<8x4xf32>
    tpu.vector_store %arg11[%c0_68, %c16], %198 {strides = array<i32>} : memref<8x32xf32, #tpu.memory_space<vmem>>, vector<8x4xf32>,
    %cst_69 = arith.constant dense<0.000000e+00> : vector<8x96xf32>
    %200 = tpu.matmul %194, %2, %cst_69 {dimension_numbers = #tpu.dot_dimension_numbers<[1], [0], [0], [1], [0, 0, 1, 1], [], []>} : vector<8x32xf32>, vector<32x96xf32>, vector<8x96xf32> -> vector<8x96xf32>
    %201 = vector.broadcast %6 : vector<1x96xf32> to vector<8x96xf32>
    %202 = arith.addf %200, %201 : vector<8x96xf32>
    %cst_70 = arith.constant dense<0.000000e+00> : vector<8x32xf32>
    %203 = tpu.matmul %198, %0, %cst_70 {dimension_numbers = #tpu.dot_dimension_numbers<[1], [0], [0], [1], [0, 0, 1, 1], [], []>} : vector<8x4xf32>, vector<4x32xf32>, vector<8x32xf32> -> vector<8x32xf32>
    %204 = vector.broadcast %4 : vector<1x32xf32> to vector<8x32xf32>
    %205 = arith.addf %203, %204 : vector<8x32xf32>
    %cst_71 = arith.constant 0.000000e+00 : f32
    %206 = vector.broadcast %cst_71 : f32 to vector<8x32xf32>
    %207 = arith.maximumf %205, %206 : vector<8x32xf32>
    %cst_72 = arith.constant dense<0.000000e+00> : vector<8x96xf32>
    %208 = tpu.matmul %207, %1, %cst_72 {dimension_numbers = #tpu.dot_dimension_numbers<[1], [0], [0], [1], [0, 0, 1, 1], [], []>} : vector<8x32xf32>, vector<32x96xf32>, vector<8x96xf32> -> vector<8x96xf32>
    %209 = vector.broadcast %5 : vector<1x96xf32> to vector<8x96xf32>
    %210 = arith.addf %208, %209 : vector<8x96xf32>
    %211 = vector.extract_strided_slice %210 {offsets = [0, 0], sizes = [8, 64], strides = [1, 1]} : vector<8x96xf32> to vector<8x64xf32>
    %212 = vector.extract_strided_slice %202 {offsets = [0, 0], sizes = [8, 64], strides = [1, 1]} : vector<8x96xf32> to vector<8x64xf32>
    %213 = arith.addf %211, %212 : vector<8x64xf32>
    %cst_73 = arith.constant 5.000000e-01 : f32
    %214 = vector.broadcast %cst_73 : f32 to vector<8x64xf32>
    %215 = arith.mulf %214, %213 : vector<8x64xf32>
    %216 = math.tanh %215 : vector<8x64xf32>
    %cst_74 = arith.constant 1.000000e+00 : f32
    %217 = vector.broadcast %cst_74 : f32 to vector<8x64xf32>
    %218 = arith.addf %216, %217 : vector<8x64xf32>
    %cst_75 = arith.constant 5.000000e-01 : f32
    %219 = vector.broadcast %cst_75 : f32 to vector<8x64xf32>
    %220 = arith.mulf %219, %218 : vector<8x64xf32>
    %221 = vector.extract_strided_slice %220 {offsets = [0, 0], sizes = [8, 32], strides = [1, 1]} : vector<8x64xf32> to vector<8x32xf32>
    %222 = vector.extract_strided_slice %220 {offsets = [0, 32], sizes = [8, 32], strides = [1, 1]} : vector<8x64xf32> to vector<8x32xf32>
    %223 = vector.extract_strided_slice %210 {offsets = [0, 64], sizes = [8, 32], strides = [1, 1]} : vector<8x96xf32> to vector<8x32xf32>
    %224 = vector.extract_strided_slice %202 {offsets = [0, 64], sizes = [8, 32], strides = [1, 1]} : vector<8x96xf32> to vector<8x32xf32>
    %225 = arith.mulf %221, %224 : vector<8x32xf32>
    %226 = arith.addf %223, %225 : vector<8x32xf32>
    %227 = math.tanh %226 : vector<8x32xf32>
    %cst_76 = arith.constant 1.000000e+00 : f32
    %228 = vector.broadcast %cst_76 : f32 to vector<8x32xf32>
    %229 = arith.subf %228, %222 : vector<8x32xf32>
    %230 = arith.mulf %229, %227 : vector<8x32xf32>
    %231 = arith.mulf %222, %194 : vector<8x32xf32>
    %232 = arith.addf %230, %231 : vector<8x32xf32>
    %233 = math.tanh %232 : vector<8x32xf32>
    %cst_77 = arith.constant dense<0.000000e+00> : vector<8x4xf32>
    %234 = tpu.matmul %233, %3, %cst_77 {dimension_numbers = #tpu.dot_dimension_numbers<[1], [0], [0], [1], [0, 0, 1, 1], [], []>} : vector<8x32xf32>, vector<32x4xf32>, vector<8x4xf32> -> vector<8x4xf32>
    %235 = vector.broadcast %7 : vector<1x4xf32> to vector<8x4xf32>
    %236 = arith.addf %234, %235 : vector<8x4xf32>
    %c0_78 = arith.constant 0 : index
    %c20 = arith.constant 20 : index
    %237 = vector.load %arg11[%c0_78, %c20] : memref<8x32xf32, #tpu.memory_space<vmem>>, vector<8x4xf32>
    tpu.vector_store %arg11[%c0_78, %c20], %236 {strides = array<i32>} : memref<8x32xf32, #tpu.memory_space<vmem>>, vector<8x4xf32>,
    %cst_79 = arith.constant dense<0.000000e+00> : vector<8x96xf32>
    %238 = tpu.matmul %232, %2, %cst_79 {dimension_numbers = #tpu.dot_dimension_numbers<[1], [0], [0], [1], [0, 0, 1, 1], [], []>} : vector<8x32xf32>, vector<32x96xf32>, vector<8x96xf32> -> vector<8x96xf32>
    %239 = vector.broadcast %6 : vector<1x96xf32> to vector<8x96xf32>
    %240 = arith.addf %238, %239 : vector<8x96xf32>
    %cst_80 = arith.constant dense<0.000000e+00> : vector<8x32xf32>
    %241 = tpu.matmul %236, %0, %cst_80 {dimension_numbers = #tpu.dot_dimension_numbers<[1], [0], [0], [1], [0, 0, 1, 1], [], []>} : vector<8x4xf32>, vector<4x32xf32>, vector<8x32xf32> -> vector<8x32xf32>
    %242 = vector.broadcast %4 : vector<1x32xf32> to vector<8x32xf32>
    %243 = arith.addf %241, %242 : vector<8x32xf32>
    %cst_81 = arith.constant 0.000000e+00 : f32
    %244 = vector.broadcast %cst_81 : f32 to vector<8x32xf32>
    %245 = arith.maximumf %243, %244 : vector<8x32xf32>
    %cst_82 = arith.constant dense<0.000000e+00> : vector<8x96xf32>
    %246 = tpu.matmul %245, %1, %cst_82 {dimension_numbers = #tpu.dot_dimension_numbers<[1], [0], [0], [1], [0, 0, 1, 1], [], []>} : vector<8x32xf32>, vector<32x96xf32>, vector<8x96xf32> -> vector<8x96xf32>
    %247 = vector.broadcast %5 : vector<1x96xf32> to vector<8x96xf32>
    %248 = arith.addf %246, %247 : vector<8x96xf32>
    %249 = vector.extract_strided_slice %248 {offsets = [0, 0], sizes = [8, 64], strides = [1, 1]} : vector<8x96xf32> to vector<8x64xf32>
    %250 = vector.extract_strided_slice %240 {offsets = [0, 0], sizes = [8, 64], strides = [1, 1]} : vector<8x96xf32> to vector<8x64xf32>
    %251 = arith.addf %249, %250 : vector<8x64xf32>
    %cst_83 = arith.constant 5.000000e-01 : f32
    %252 = vector.broadcast %cst_83 : f32 to vector<8x64xf32>
    %253 = arith.mulf %252, %251 : vector<8x64xf32>
    %254 = math.tanh %253 : vector<8x64xf32>
    %cst_84 = arith.constant 1.000000e+00 : f32
    %255 = vector.broadcast %cst_84 : f32 to vector<8x64xf32>
    %256 = arith.addf %254, %255 : vector<8x64xf32>
    %cst_85 = arith.constant 5.000000e-01 : f32
    %257 = vector.broadcast %cst_85 : f32 to vector<8x64xf32>
    %258 = arith.mulf %257, %256 : vector<8x64xf32>
    %259 = vector.extract_strided_slice %258 {offsets = [0, 0], sizes = [8, 32], strides = [1, 1]} : vector<8x64xf32> to vector<8x32xf32>
    %260 = vector.extract_strided_slice %258 {offsets = [0, 32], sizes = [8, 32], strides = [1, 1]} : vector<8x64xf32> to vector<8x32xf32>
    %261 = vector.extract_strided_slice %248 {offsets = [0, 64], sizes = [8, 32], strides = [1, 1]} : vector<8x96xf32> to vector<8x32xf32>
    %262 = vector.extract_strided_slice %240 {offsets = [0, 64], sizes = [8, 32], strides = [1, 1]} : vector<8x96xf32> to vector<8x32xf32>
    %263 = arith.mulf %259, %262 : vector<8x32xf32>
    %264 = arith.addf %261, %263 : vector<8x32xf32>
    %265 = math.tanh %264 : vector<8x32xf32>
    %cst_86 = arith.constant 1.000000e+00 : f32
    %266 = vector.broadcast %cst_86 : f32 to vector<8x32xf32>
    %267 = arith.subf %266, %260 : vector<8x32xf32>
    %268 = arith.mulf %267, %265 : vector<8x32xf32>
    %269 = arith.mulf %260, %232 : vector<8x32xf32>
    %270 = arith.addf %268, %269 : vector<8x32xf32>
    %271 = math.tanh %270 : vector<8x32xf32>
    %cst_87 = arith.constant dense<0.000000e+00> : vector<8x4xf32>
    %272 = tpu.matmul %271, %3, %cst_87 {dimension_numbers = #tpu.dot_dimension_numbers<[1], [0], [0], [1], [0, 0, 1, 1], [], []>} : vector<8x32xf32>, vector<32x4xf32>, vector<8x4xf32> -> vector<8x4xf32>
    %273 = vector.broadcast %7 : vector<1x4xf32> to vector<8x4xf32>
    %274 = arith.addf %272, %273 : vector<8x4xf32>
    %c0_88 = arith.constant 0 : index
    %c24 = arith.constant 24 : index
    %275 = vector.load %arg11[%c0_88, %c24] : memref<8x32xf32, #tpu.memory_space<vmem>>, vector<8x4xf32>
    tpu.vector_store %arg11[%c0_88, %c24], %274 {strides = array<i32>} : memref<8x32xf32, #tpu.memory_space<vmem>>, vector<8x4xf32>,
    %cst_89 = arith.constant dense<0.000000e+00> : vector<8x96xf32>
    %276 = tpu.matmul %270, %2, %cst_89 {dimension_numbers = #tpu.dot_dimension_numbers<[1], [0], [0], [1], [0, 0, 1, 1], [], []>} : vector<8x32xf32>, vector<32x96xf32>, vector<8x96xf32> -> vector<8x96xf32>
    %277 = vector.broadcast %6 : vector<1x96xf32> to vector<8x96xf32>
    %278 = arith.addf %276, %277 : vector<8x96xf32>
    %cst_90 = arith.constant dense<0.000000e+00> : vector<8x32xf32>
    %279 = tpu.matmul %274, %0, %cst_90 {dimension_numbers = #tpu.dot_dimension_numbers<[1], [0], [0], [1], [0, 0, 1, 1], [], []>} : vector<8x4xf32>, vector<4x32xf32>, vector<8x32xf32> -> vector<8x32xf32>
    %280 = vector.broadcast %4 : vector<1x32xf32> to vector<8x32xf32>
    %281 = arith.addf %279, %280 : vector<8x32xf32>
    %cst_91 = arith.constant 0.000000e+00 : f32
    %282 = vector.broadcast %cst_91 : f32 to vector<8x32xf32>
    %283 = arith.maximumf %281, %282 : vector<8x32xf32>
    %cst_92 = arith.constant dense<0.000000e+00> : vector<8x96xf32>
    %284 = tpu.matmul %283, %1, %cst_92 {dimension_numbers = #tpu.dot_dimension_numbers<[1], [0], [0], [1], [0, 0, 1, 1], [], []>} : vector<8x32xf32>, vector<32x96xf32>, vector<8x96xf32> -> vector<8x96xf32>
    %285 = vector.broadcast %5 : vector<1x96xf32> to vector<8x96xf32>
    %286 = arith.addf %284, %285 : vector<8x96xf32>
    %287 = vector.extract_strided_slice %286 {offsets = [0, 0], sizes = [8, 64], strides = [1, 1]} : vector<8x96xf32> to vector<8x64xf32>
    %288 = vector.extract_strided_slice %278 {offsets = [0, 0], sizes = [8, 64], strides = [1, 1]} : vector<8x96xf32> to vector<8x64xf32>
    %289 = arith.addf %287, %288 : vector<8x64xf32>
    %cst_93 = arith.constant 5.000000e-01 : f32
    %290 = vector.broadcast %cst_93 : f32 to vector<8x64xf32>
    %291 = arith.mulf %290, %289 : vector<8x64xf32>
    %292 = math.tanh %291 : vector<8x64xf32>
    %cst_94 = arith.constant 1.000000e+00 : f32
    %293 = vector.broadcast %cst_94 : f32 to vector<8x64xf32>
    %294 = arith.addf %292, %293 : vector<8x64xf32>
    %cst_95 = arith.constant 5.000000e-01 : f32
    %295 = vector.broadcast %cst_95 : f32 to vector<8x64xf32>
    %296 = arith.mulf %295, %294 : vector<8x64xf32>
    %297 = vector.extract_strided_slice %296 {offsets = [0, 0], sizes = [8, 32], strides = [1, 1]} : vector<8x64xf32> to vector<8x32xf32>
    %298 = vector.extract_strided_slice %296 {offsets = [0, 32], sizes = [8, 32], strides = [1, 1]} : vector<8x64xf32> to vector<8x32xf32>
    %299 = vector.extract_strided_slice %286 {offsets = [0, 64], sizes = [8, 32], strides = [1, 1]} : vector<8x96xf32> to vector<8x32xf32>
    %300 = vector.extract_strided_slice %278 {offsets = [0, 64], sizes = [8, 32], strides = [1, 1]} : vector<8x96xf32> to vector<8x32xf32>
    %301 = arith.mulf %297, %300 : vector<8x32xf32>
    %302 = arith.addf %299, %301 : vector<8x32xf32>
    %303 = math.tanh %302 : vector<8x32xf32>
    %cst_96 = arith.constant 1.000000e+00 : f32
    %304 = vector.broadcast %cst_96 : f32 to vector<8x32xf32>
    %305 = arith.subf %304, %298 : vector<8x32xf32>
    %306 = arith.mulf %305, %303 : vector<8x32xf32>
    %307 = arith.mulf %298, %270 : vector<8x32xf32>
    %308 = arith.addf %306, %307 : vector<8x32xf32>
    %309 = math.tanh %308 : vector<8x32xf32>
    %cst_97 = arith.constant dense<0.000000e+00> : vector<8x4xf32>
    %310 = tpu.matmul %309, %3, %cst_97 {dimension_numbers = #tpu.dot_dimension_numbers<[1], [0], [0], [1], [0, 0, 1, 1], [], []>} : vector<8x32xf32>, vector<32x4xf32>, vector<8x4xf32> -> vector<8x4xf32>
    %311 = vector.broadcast %7 : vector<1x4xf32> to vector<8x4xf32>
    %312 = arith.addf %310, %311 : vector<8x4xf32>
    %c0_98 = arith.constant 0 : index
    %c28 = arith.constant 28 : index
    %313 = vector.load %arg11[%c0_98, %c28] : memref<8x32xf32, #tpu.memory_space<vmem>>, vector<8x4xf32>
    tpu.vector_store %arg11[%c0_98, %c28], %312 {strides = array<i32>} : memref<8x32xf32, #tpu.memory_space<vmem>>, vector<8x4xf32>,
    %c0_99 = arith.constant 0 : index
    %c0_100 = arith.constant 0 : index
    %314 = vector.load %arg12[%c0_99, %c0_100] : memref<8x32xf32, #tpu.memory_space<vmem>>, vector<8x32xf32>
    tpu.vector_store %arg12[%c0_99, %c0_100], %308 {strides = array<i32>} : memref<8x32xf32, #tpu.memory_space<vmem>>, vector<8x32xf32>,
    return
  }
  func.func @transform_0(%arg0: i32) -> (i32, i32) {
    %c0_i32 = arith.constant 0 : i32
    %c0_i32_0 = arith.constant 0 : i32
    return %arg0, %c0_i32 : i32, i32
  }
  func.func @transform_1(%arg0: i32) -> (i32, i32) {
    %c0_i32 = arith.constant 0 : i32
    %c0_i32_0 = arith.constant 0 : i32
    return %arg0, %c0_i32 : i32, i32
  }
  func.func @transform_2(%arg0: i32) -> (i32, i32) {
    %c0_i32 = arith.constant 0 : i32
    %c0_i32_0 = arith.constant 0 : i32
    %c0_i32_1 = arith.constant 0 : i32
    return %c0_i32, %c0_i32_0 : i32, i32
  }
  func.func @transform_3(%arg0: i32) -> (i32, i32) {
    %c0_i32 = arith.constant 0 : i32
    %c0_i32_0 = arith.constant 0 : i32
    %c0_i32_1 = arith.constant 0 : i32
    return %c0_i32, %c0_i32_0 : i32, i32
  }
  func.func @transform_4(%arg0: i32) -> (i32, i32) {
    %c0_i32 = arith.constant 0 : i32
    %c0_i32_0 = arith.constant 0 : i32
    %c0_i32_1 = arith.constant 0 : i32
    return %c0_i32, %c0_i32_0 : i32, i32
  }
  func.func @transform_5(%arg0: i32) -> (i32, i32) {
    %c0_i32 = arith.constant 0 : i32
    %c0_i32_0 = arith.constant 0 : i32
    %c0_i32_1 = arith.constant 0 : i32
    return %c0_i32, %c0_i32_0 : i32, i32
  }
  func.func @transform_6(%arg0: i32) -> (i32, i32) {
    %c0_i32 = arith.constant 0 : i32
    %c0_i32_0 = arith.constant 0 : i32
    %c0_i32_1 = arith.constant 0 : i32
    return %c0_i32, %c0_i32_0 : i32, i32
  }
  func.func @transform_7(%arg0: i32) -> (i32, i32) {
    %c0_i32 = arith.constant 0 : i32
    %c0_i32_0 = arith.constant 0 : i32
    %c0_i32_1 = arith.constant 0 : i32
    return %c0_i32, %c0_i32_0 : i32, i32
  }
  func.func @transform_8(%arg0: i32) -> (i32, i32) {
    %c0_i32 = arith.constant 0 : i32
    %c0_i32_0 = arith.constant 0 : i32
    %c0_i32_1 = arith.constant 0 : i32
    return %c0_i32, %c0_i32_0 : i32, i32
  }
  func.func @transform_9(%arg0: i32) -> (i32, i32) {
    %c0_i32 = arith.constant 0 : i32
    %c0_i32_0 = arith.constant 0 : i32
    %c0_i32_1 = arith.constant 0 : i32
    return %c0_i32, %c0_i32_0 : i32, i32
  }
  func.func @transform_10(%arg0: i32) -> (i32, i32) {
    %c0_i32 = arith.constant 0 : i32
    %c0_i32_0 = arith.constant 0 : i32
    return %arg0, %c0_i32 : i32, i32
  }
  func.func @transform_11(%arg0: i32) -> (i32, i32) {
    %c0_i32 = arith.constant 0 : i32
    %c0_i32_0 = arith.constant 0 : i32
    return %arg0, %c0_i32 : i32, i32
  }
}

</mosaic_0001>

<bundles_post_ra>
// kernel: prediction_decoder_forward.1
= control target key start
LH: loop header
LB: loop body
LE: loop exit
PB: predicated region body
PF: predicated region fallthrough
CT: control target
= control target key end

     0   :  { %17 = vsyncpa [#allocation3], 0  ;;  %s4169_s0 = inlined_call_operand.hbm [shape: f32[8,4], index: 0, kind: input, shape index: {}]   ;;  %s4170_s1 = inlined_call_operand.hbm [shape: f32[8,32], index: 1, kind: input, shape index: {}]   ;;  %s4171_s2 = inlined_call_operand.vmem [shape: f32[4,32], index: 2, kind: input, shape index: {}]   ;;  %s4172_s3 = inlined_call_operand.vmem [shape: f32[1,32], index: 3, kind: input, shape index: {}]   ;;  %s4173_s4 = inlined_call_operand.vmem [shape: f32[32,96], index: 4, kind: input, shape index: {}]   ;;  %s4174_s5 = inlined_call_operand.hbm [shape: f32[1,96], index: 5, kind: input, shape index: {}]   ;;  %s4175_s6 = inlined_call_operand.vmem [shape: f32[32,96], index: 6, kind: input, shape index: {}]   ;;  %s4176_s7 = inlined_call_operand.hbm [shape: f32[1,96], index: 7, kind: input, shape index: {}]   ;;  %s4177_s8 = inlined_call_operand.vmem [shape: f32[32,4], index: 8, kind: input, shape index: {}]   ;;  %s4178_s9 = inlined_call_operand.hbm [shape: f32[1,4], index: 9, kind: input, shape index: {}]   ;;  %s4179_s10 = inlined_call_operand.vmem [shape: f32[8,32], index: 10, kind: output, shape index: {0}]   ;;  %s4180_s11 = inlined_call_operand.hbm [shape: f32[8,32], index: 11, kind: output, shape index: {1}]  }
   0x1   :  { %18 = vsyncpa [#allocation6], 0 }
   0x2   :  { %19 = vsyncpa [#allocation9], 0 }
   0x3   :  { %20 = vsyncpa [#allocation4], 0  ;;  %s3620_s17 = smov [#allocation5]   ;;  %s3621_s19 = smov [#allocation8]  }
   0x4   :  { %s37_s18 = sshll.u32 %s3620_s17, 4  ;;  %s65_s20 = sshll.u32 %s3621_s19, 4  ;;  %s38_s18 = int_to_ptr.vmem [resolvable:$true] %s37_s18  ;;  %s66_s20 = int_to_ptr.vmem [resolvable:$true] %s65_s20 }
   0x5   :  { %s3480_s23 = scalar_lea.hbm %s4170_s1, 128 }
   0x6   :  { %p3481_p0 = scmp.ne.s32.totalorder %s4170_s1, %s3480_s23  ;;  %p3484_p1 = scmp.lt.u32.totalorder %s3480_s23, %s4170_s1 }
   0x8   :  { %p3486_p2 = pnand %p3484_p1, %p3481_p0 }
   0xa   :  { %3489 = shalt.err (!%p3486_p2)
}
   0xb   :  { %s3490_s28 = scalar_lea.vmem %s38_s18, 128  ;;  %p3495_p4 = scmp.lt.s32.totalorder %s38_s18, %s38_s18 }
   0xc   :  { %p3491_p3 = scmp.ne.s32.totalorder %s38_s18, %s3490_s28  ;;  %p3496_p5 = scmp.lt.s32.totalorder %s3490_s28, %s3490_s28 }
   0xe   :  { %p3497_p6 = por %p3496_p5, %p3495_p4 }
  0x10   :  { %p3498_p7 = pnand %p3497_p6, %p3491_p3 }
  0x12   :  { %3501 = shalt.err (!%p3498_p7)
}
  0x13   :  { %40 = dma.hbm_to_vmem [thread:$0]  %s4170_s1, 128, %s38_s18, [#allocation6]  }
  0x14   :  { %s3502_s14 = scalar_lea.hbm %s4176_s7, 16 }
  0x15   :  { %p3503_p8 = scmp.ne.s32.totalorder %s4176_s7, %s3502_s14  ;;  %p3506_p9 = scmp.lt.u32.totalorder %s3502_s14, %s4176_s7 }
  0x17   :  { %p3508_p10 = pnand %p3506_p9, %p3503_p8 }
  0x19   :  { %3511 = shalt.err (!%p3508_p10)
}
  0x1a   :  { %s3512_s21 = scalar_lea.vmem %s66_s20, 16  ;;  %s3516_s22 = scalar_lea.vmem %s66_s20, 32 }
  0x1b   :  { %p3513_p11 = scmp.ne.s32.totalorder %s66_s20, %s3512_s21  ;;  %p3517_p12 = scmp.lt.s32.totalorder %s66_s20, %s66_s20 }
  0x1c   :  { %p3518_p13 = scmp.lt.s32.totalorder %s3516_s22, %s3512_s21 }
  0x1e   :  { %p3519_p0 = por %p3518_p13, %p3517_p12 }
  0x20   :  { %p3520_p1 = pnand %p3519_p0, %p3513_p11 }
  0x22   :  { %3523 = shalt.err (!%p3520_p1)
}
  0x23   :  { %68 = dma.hbm_to_vmem [thread:$0]  %s4176_s7, 16, %s66_s20, [#allocation9]  }
  0x24   :  { %s3622_s23 = smov [#allocation2]   ;;  %s3623_s25 = smov [#allocation7]  }
  0x25   :  { %s27_s24 = sshll.u32 %s3622_s23, 4  ;;  %s53_s26 = sshll.u32 %s3623_s25, 4  ;;  %s28_s24 = int_to_ptr.vmem [resolvable:$true] %s27_s24  ;;  %s54_s26 = int_to_ptr.vmem [resolvable:$true] %s53_s26 }
  0x26   :  { %s3524_s29 = scalar_lea.hbm %s4169_s0, 128 }
  0x27   :  { %p3525_p2 = scmp.ne.s32.totalorder %s4169_s0, %s3524_s29  ;;  %p3528_p3 = scmp.lt.u32.totalorder %s3524_s29, %s4169_s0 }
  0x29   :  { %p3530_p4 = pnand %p3528_p3, %p3525_p2 }
  0x2b   :  { %3533 = shalt.err (!%p3530_p4)
}
  0x2c   :  { %s3534_s7 = scalar_lea.vmem %s28_s24, 128  ;;  %p3539_p6 = scmp.lt.s32.totalorder %s28_s24, %s28_s24 }
  0x2d   :  { %p3535_p5 = scmp.ne.s32.totalorder %s28_s24, %s3534_s7  ;;  %p3540_p7 = scmp.lt.s32.totalorder %s3534_s7, %s3534_s7 }
  0x2f   :  { %p3541_p8 = por %p3540_p7, %p3539_p6 }
  0x31   :  { %p3542_p9 = pnand %p3541_p8, %p3535_p5 }
  0x33   :  { %3545 = shalt.err (!%p3542_p9)
}
  0x34   :  { %30 = dma.hbm_to_vmem [thread:$0]  %s4169_s0, 128, %s28_s24, [#allocation3]  }
  0x35   :  { %s3546_s19 = scalar_lea.hbm %s4174_s5, 16 }
  0x36   :  { %p3547_p10 = scmp.ne.s32.totalorder %s4174_s5, %s3546_s19  ;;  %p3550_p11 = scmp.lt.u32.totalorder %s3546_s19, %s4174_s5 }
  0x38   :  { %p3552_p12 = pnand %p3550_p11, %p3547_p10 }
  0x3a   :  { %3555 = shalt.err (!%p3552_p12)
}
  0x3b   :  { %s3556_s23 = scalar_lea.vmem %s54_s26, 16  ;;  %s3560_s25 = scalar_lea.vmem %s54_s26, 32 }
  0x3c   :  { %p3557_p13 = scmp.ne.s32.totalorder %s54_s26, %s3556_s23  ;;  %p3561_p0 = scmp.lt.s32.totalorder %s54_s26, %s54_s26 }
  0x3d   :  { %p3562_p1 = scmp.lt.s32.totalorder %s3560_s25, %s3556_s23 }
  0x3f   :  { %p3563_p2 = por %p3562_p1, %p3561_p0 }
  0x41   :  { %p3564_p3 = pnand %p3563_p2, %p3557_p13 }
  0x43   :  { %3567 = shalt.err (!%p3564_p3)
}
  0x44   :  { %56 = dma.hbm_to_vmem [thread:$0]  %s4174_s5, 16, %s54_s26, [#allocation6]  }
  0x45   :  { %s3624_s27 = smov [#allocation10]   ;;  %s3568_s12 = scalar_lea.hbm %s4178_s9, 16 }
  0x46   :  { %s77_s28 = sshll.u32 %s3624_s27, 4  ;;  %p3569_p4 = scmp.ne.s32.totalorder %s4178_s9, %s3568_s12  ;;  %s78_s28 = int_to_ptr.vmem [resolvable:$true] %s77_s28 }
  0x47   :  { %p3572_p5 = scmp.lt.u32.totalorder %s3568_s12, %s4178_s9 }
  0x49   :  { %p3574_p6 = pnand %p3572_p5, %p3569_p4 }
  0x4b   :  { %3577 = shalt.err (!%p3574_p6)
}
  0x4c   :  { %s3578_s15 = scalar_lea.vmem %s78_s28, 16  ;;  %s3582_s5 = scalar_lea.vmem %s78_s28, 32 }
  0x4d   :  { %p3579_p7 = scmp.ne.s32.totalorder %s78_s28, %s3578_s15  ;;  %p3583_p8 = scmp.lt.s32.totalorder %s78_s28, %s78_s28 }
  0x4e   :  { %p3584_p9 = scmp.lt.s32.totalorder %s3582_s5, %s3578_s15 }
  0x50   :  { %p3585_p10 = por %p3584_p9, %p3583_p8 }
  0x52   :  { %p3586_p11 = pnand %p3585_p10, %p3579_p7 }
  0x54   :  { %3589 = shalt.err (!%p3586_p11)
}
  0x55   :  { %80 = dma.hbm_to_vmem [thread:$0]  %s4178_s9, 16, %s78_s28, [#allocation9]  }
  0x56   :  { %3612 = dma.done.wait [#allocation3], 128  }
  0x57   :  { %3613 = vsyncadd [#allocation3], 4294967168 }
  0x58   :  { %3614 = dma.done.wait [#allocation6], 144  }
  0x59   :  { %3615 = vsyncadd [#allocation6], 4294967152 }
  0x5a   :  { %3616 = dma.done.wait [#allocation9], 32  }
  0x5b   :  { %3617 = vsyncadd [#allocation9], 4294967264  ;;  %v3625_v0 = vmov 0.0   ;;  %vm3626_vm0 = vmmov 0   ;;  %v3627_v1 = vmov 0.0|0.0   ;;  %vm205_vm1 = vcmask 1043456  }
  0x5c   :  { %2976 = vmatprep.subr.mxu1 %v3625_v0  ;;  %2978 = vmatprep.mubr.msk.f32.mxu1 %vm3626_vm0, %v3625_v0  ;;  %vm201_vm2 = vcmask 31744   ;;  %v3768_v2 = vld [vmem:[%s4171_s2] sm:$0xf]  ;;  %v102_v5 = vld [vmem:[%s4175_s6 + $0x8] sm:$0xff]  ;;  %v103_v6 = vld [vmem:[%s4175_s6 + $0x10] sm:$0xff]  ;;  %vm121_vm3 = vcmask 261120  }
  0x5d   :  { %3269 = vmatprep.subr.bf16.mxu0 %v3627_v1  ;;  %2973 = vmatprep.mubr.msk.f32.mxu0 %vm3626_vm0, %v3625_v0  ;;  %v113_v3 = vld [vmem:[#allocation2] sm:$0xff]  ;;  %v104_v7 = vld [vmem:[%s4175_s6 + $0x18] sm:$0xff]  ;;  %v98_v10 = vld [vmem:[%s4173_s4 + $0x8] sm:$0xff]  ;;  %s3630_s7 = smov 32   ;;  %s3631_s22 = smov 4   ;;  %vm795_vm4 = vcmask 64544  }
  0x5e   :  { %v101_v4 = vld [vmem:[%s4175_s6] sm:$0xff]  ;;  %2977 = vmatpush3.msk.msra.mxu1 %vm205_vm1, %v3768_v2  ;;  %v3799_v12 = vpack.c.bf16 %v104_v7, %v103_v6  ;;  %v114_v13 = vld [vmem:[#allocation5] sm:$0xff]  ;;  %v99_v14 = vld [vmem:[%s4173_s4 + $0x10] sm:$0xff]  ;;  %s3632_s1 = smov 12   ;;  %s3633_s18 = smov 20   ;;  %vm1122_vm5 = vcmask 97344  }
  0x5f   :  { %2979 = vmatmul.mubr.msk.f32.vlgmr.msra.gmra.mrb[0].mxu1 %vm201_vm2, %v113_v3  ;;  %v3785_v8 = vpack.c.bf16 %v102_v5, %v101_v4  ;;  %3275 = vmatprep.subr.bf16.mxu1 %v3627_v1  ;;  %v97_v9 = vld [vmem:[%s4173_s4] sm:$0xff]  ;;  %v100_v15 = vld [vmem:[%s4173_s4 + $0x18] sm:$0xff]  ;;  %v3829_v22 = vld [vmem:[#allocation8] ss:$0 sm:$0xff]  ;;  %s3629_s4 = smov 96   ;;  %s3634_s0 = smov 8  }
  0x60   :  { %v3794_v11 = vpack.c.bf16 %v98_v10, %v97_v9  ;;  %2989 = vmatprep.mubr.msk.f32.mxu1 %vm3626_vm0, %v3625_v0  ;;  %v3815_v16 = vpack.c.bf16 %v100_v15, %v99_v14  ;;  %v3822_v17 = vld [vmem:[%s4172_s3] ss:$0 sm:$0xff]  ;;  %s3628_s3 = smov 64   ;;  %v3836_v26 = vld [vmem:[#allocation7] ss:$0 sm:$0xff]  ;;  %v106_v41 = vld [vmem:[%s4177_s8 + $0x8] sm:$0xff] }
  0x61   :  { %3271 = vmatpush3.bf16.msra.mxu0 %v3785_v8  ;;  %v105_v40 = vld [vmem:[%s4177_s8] sm:$0xff]  ;;  %v107_v42 = vld [vmem:[%s4177_s8 + $0x10] sm:$0xff]  ;;  %v108_v44 = vld [vmem:[%s4177_s8 + $0x18] sm:$0xff]  ;;  %s3635_s2 = smov 16   ;;  %s3636_s24 = smov 24   ;;  %vm1449_vm6 = vcmask 130144  }
  0x62   :  { %3272 = vmatprep.subr.bf16.mxu0 %v3627_v1  ;;  %3277 = vmatpush3.bf16.msra.mxu1 %v3794_v11  ;;  %v3850_v43 = vpack.c.bf16 %v106_v41, %v105_v40  ;;  %v3856_v45 = vpack.c.bf16 %v108_v44, %v107_v42  ;;  %v3878_v58 = vld [vmem:[#allocation10] ss:$0 sm:$0xff]  ;;  %vm1776_vm7 = vcmask 162944   ;;  %vm2103_vm8 = vcmask 195744  }
  0x63   :  { %3278 = vmatprep.subr.bf16.mxu1 %v3627_v1  ;;  %vm2430_vm9 = vcmask 228544  }
  0x65   :  { %3274 = vmatpush3.bf16.msra.mxu0 %v3799_v12 }
  0x66   :  { %3281 = vmatprep.subr.bf16.mxu0 %v3627_v1  ;;  %3280 = vmatpush3.bf16.msra.mxu1 %v3815_v16 }
  0x67   :  { %3287 = vmatprep.subr.bf16.mxu1 %v3627_v1 }
  0x68   :  { %2974 = vmatmul.mubr.msk.f32.vlgmr.msra.gmra.mrb[0].mxu0 %vm121_vm3, %v114_v13 }
  0x69   :  { %3000 = vmatprep.mubr.msk.f32.mxu0 %vm3626_vm0, %v3625_v0  ;;  %3283 = vmatpush3.bf16.msra.mxu0 %v3850_v43 }
  0x6a   :  { %3284 = vmatprep.subr.bf16.mxu0 %v3627_v1 }
  0x6d   :  { %3286 = vmatpush3.bf16.msra.mxu0 %v3856_v45 }
  0x6e   :  { %3014 = vmatprep.subr.mxu0 %v3625_v0 }
 0x132   :  { %v275_v18 = vpop.f32.mrb[0].mxu1 }
 0x133   :  { %v276_v19 = vadd.f32 %v3822_v17, %v275_v18  ;;  %v2980_v20 = vpop.f32.mrb[1].mxu1 }
 0x135   :  { %v279_v21 = vmax.f32 %v276_v19, 0.0 }
 0x137   :  { %2990 = vmatmul.mubr.msk.f32.vlgmr.msra.gmra.mrb[2].mxu1 %vm121_vm3, %v279_v21 }
 0x138   :  { %3289 = vmatpush3.bf16.msra.mxu1 %v3785_v8  ;;  %3011 = vmatprep.mubr.msk.f32.mxu1 %vm3626_vm0, %v3625_v0 }
 0x139   :  { %3290 = vmatprep.subr.bf16.mxu1 %v3627_v1 }
 0x13b   :  { %v191_v23 = vpop.f32.mrb[0].mxu0 }
 0x13c   :  { %v192_v24 = vadd.f32 %v3829_v22, %v191_v23  ;;  %v2975_v25 = vpop.f32.mrb[1].mxu0  ;;  %3292 = vmatpush3.bf16.msra.mxu1 %v3799_v12 }
 0x13d   :  { %3293 = vmatprep.subr.bf16.mxu1 %v3627_v1 }
 0x13e   :  { %365 = vrot.lane.b32.xlu0 %v192_v24, %s3628_s3 }
 0x1b0   :  { %v366_v34 = vpop.permute.xlu0 %365 }
 0x20a   :  { %v355_v27 = vpop.f32.mrb[2].mxu1 }
 0x20b   :  { %v356_v28 = vadd.f32 %v3836_v26, %v355_v27  ;;  %v2991_v29 = vpop.f32.mrb[3].mxu1 }
 0x20d   :  { %v359_v30 = vadd.f32 %v356_v28, %v192_v24 }
 0x20f   :  { %v360_v31 = vmul.f32 0.5, %v359_v30 }
 0x211   :  { %3432 = vtanh.f32 %v360_v31 }
 0x21b   :  { %v3433_v32 = vpop.eup %3432 }
 0x21c   :  { %v362_v33 = vadd.f32 1.0, %v3433_v32 }
 0x21e   :  { %v363_v35 = vmul.f32 0.5, %v362_v33 }
 0x220   :  { %v368_v36 = vmul.f32 %v366_v34, %v363_v35  ;;  %v375_v47 = vsub.f32 1.0, %v363_v35 }
 0x222   :  { %370 = vrot.lane.b32.xlu0 %v368_v36, %s3628_s3 }
 0x294   :  { %v371_v37 = vpop.permute.xlu0 %370 }
 0x295   :  { %v373_v38 = vadd.f32 %v371_v37, %v356_v28 }
 0x297   :  { %3434 = vtanh.f32 %v373_v38 }
 0x2a1   :  { %v3435_v39 = vpop.eup %3434 }
 0x2a2   :  { %377 = vrot.lane.b32.xlu1 %v3435_v39, %s3629_s4 }
 0x2a6   :  { %381 = vrot.lane.b32.xlu1 %v114_v13, %s3630_s7  ;;  %s3637_s7 = smov [#allocation11]  }
 0x2a7   :  { %s2772_s20 = sshll.u32 %s3637_s7, 4  ;;  %s2773_s20 = int_to_ptr.vmem [resolvable:$true] %s2772_s20 }
 0x2a8   :  { %s3590_s15 = scalar_lea.vmem %s2773_s20, 128  ;;  %p3595_p13 = scmp.lt.s32.totalorder %s2773_s20, %s2773_s20 }
 0x2a9   :  { %p3591_p12 = scmp.ne.s32.totalorder %s2773_s20, %s3590_s15  ;;  %p3596_p0 = scmp.lt.s32.totalorder %s3590_s15, %s3590_s15 }
 0x2ab   :  { %p3597_p1 = por %p3596_p0, %p3595_p13 }
 0x2ad   :  { %p3598_p2 = pnand %p3597_p1, %p3591_p12 }
 0x314   :  { %v378_v46 = vpop.permute.xlu1 %377 }
 0x315   :  { %v380_v49 = vmul.f32 %v378_v46, %v375_v47 }
 0x318   :  { %v382_v48 = vpop.permute.xlu1 %381 }
 0x319   :  { %v384_v50 = vmul.f32 %v382_v48, %v363_v35 }
 0x31b   :  { %v385_v51 = vadd.f32 %v384_v50, %v380_v49 }
 0x31d   :  { %3436 = vtanh.f32 %v385_v51  ;;  %470 = vrot.lane.b32.xlu1 %v385_v51, %s3629_s4 }
 0x327   :  { %v3437_v52 = vpop.eup %3436 }
 0x328   :  { %394 = vrot.lane.b32.xlu0 %v3437_v52, %s3629_s4 }
 0x38f   :  { %v471_v53 = vpop.permute.xlu1 %470 }
 0x390   :  { %3012 = vmatmul.mubr.msk.f32.vlgmr.msra.gmra.mrb[4].mxu1 %vm121_vm3, %v471_v53 }
 0x391   :  { %3295 = vmatpush3.bf16.msra.mxu1 %v3794_v11  ;;  %3027 = vmatprep.mubr.msk.f32.mxu1 %vm3626_vm0, %v3625_v0 }
 0x392   :  { %3296 = vmatprep.subr.bf16.mxu1 %v3627_v1 }
 0x395   :  { %3298 = vmatpush3.bf16.msra.mxu1 %v3815_v16 }
 0x396   :  { %3305 = vmatprep.subr.bf16.mxu1 %v3627_v1 }
 0x39a   :  { %v395_v54 = vpop.permute.xlu0 %394 }
 0x39b   :  { %3001 = vmatmul.mubr.msk.f32.vlgmr.msra.gmra.mrb[2].mxu0 %vm121_vm3, %v395_v54 }
 0x39c   :  { %3015 = vmatpush3.msk.msra.mxu0 %vm205_vm1, %v3768_v2  ;;  %3016 = vmatprep.mubr.msk.f32.mxu0 %vm3626_vm0, %v3625_v0 }
 0x39d   :  { %3299 = vmatprep.subr.bf16.mxu0 %v3627_v1 }
 0x463   :  { %v540_v55 = vpop.f32.mrb[4].mxu1 }
 0x464   :  { %v541_v56 = vadd.f32 %v3829_v22, %v540_v55  ;;  %v3013_v57 = vpop.f32.mrb[5].mxu1 }
 0x466   :  { %697 = vrot.lane.b32.xlu0 %v541_v56, %s3628_s3 }
 0x46e   :  { %v464_v59 = vpop.f32.mrb[2].mxu0 }
 0x46f   :  { %v465_v60 = vadd.f32 %v3878_v58, %v464_v59  ;;  %v3002_v61 = vpop.f32.mrb[3].mxu0 }
 0x471   :  { %468 = vst.msk [vmem:[%s4179_s10] sm:$0xff] %vm201_vm2, %v465_v60  ;;  %3017 = vmatmul.mubr.msk.f32.vlgmr.msra.gmra.mrb[4].mxu0 %vm201_vm2, %v465_v60 }
 0x472   :  { %3301 = vmatpush3.bf16.msra.mxu0 %v3850_v43  ;;  %3038 = vmatprep.mubr.msk.f32.mxu0 %vm3626_vm0, %v3625_v0 }
 0x473   :  { %3302 = vmatprep.subr.bf16.mxu0 %v3627_v1 }
 0x476   :  { %3304 = vmatpush3.bf16.msra.mxu0 %v3856_v45 }
 0x477   :  { %3052 = vmatprep.subr.mxu0 %v3625_v0 }
 0x4d8   :  { %v698_v18 = vpop.permute.xlu0 %697 }
 0x544   :  { %v613_v62 = vpop.f32.mrb[4].mxu0 }
 0x545   :  { %v614_v63 = vadd.f32 %v3822_v17, %v613_v62  ;;  %v3018_v3 = vpop.f32.mrb[5].mxu0 }
 0x547   :  { %v617_v4 = vmax.f32 %v614_v63, 0.0 }
 0x549   :  { %3028 = vmatmul.mubr.msk.f32.vlgmr.msra.gmra.mrb[6].mxu1 %vm121_vm3, %v617_v4 }
 0x54a   :  { %3307 = vmatpush3.bf16.msra.mxu1 %v3785_v8  ;;  %3049 = vmatprep.mubr.msk.f32.mxu1 %vm3626_vm0, %v3625_v0 }
 0x54b   :  { %3308 = vmatprep.subr.bf16.mxu1 %v3627_v1 }
 0x54e   :  { %3310 = vmatpush3.bf16.msra.mxu1 %v3799_v12 }
 0x54f   :  { %3317 = vmatprep.subr.bf16.mxu1 %v3627_v1 }
 0x61c   :  { %v687_v5 = vpop.f32.mrb[6].mxu1 }
 0x61d   :  { %v688_v6 = vadd.f32 %v3836_v26, %v687_v5  ;;  %v3029_v7 = vpop.f32.mrb[7].mxu1 }
 0x61f   :  { %v691_v9 = vadd.f32 %v688_v6, %v541_v56 }
 0x621   :  { %v692_v10 = vmul.f32 0.5, %v691_v9 }
 0x623   :  { %3438 = vtanh.f32 %v692_v10 }
 0x62d   :  { %v3439_v13 = vpop.eup %3438 }
 0x62e   :  { %v694_v14 = vadd.f32 1.0, %v3439_v13 }
 0x630   :  { %v695_v15 = vmul.f32 0.5, %v694_v14 }
 0x632   :  { %v700_v19 = vmul.f32 %v698_v18, %v695_v15  ;;  %v707_v24 = vsub.f32 1.0, %v695_v15  ;;  %v713_v27 = vmul.f32 %v695_v15, %v385_v51 }
 0x634   :  { %702 = vrot.lane.b32.xlu1 %v700_v19, %s3628_s3 }
 0x6a6   :  { %v703_v20 = vpop.permute.xlu1 %702 }
 0x6a7   :  { %v705_v21 = vadd.f32 %v703_v20, %v688_v6 }
 0x6a9   :  { %3440 = vtanh.f32 %v705_v21 }
 0x6b3   :  { %v3441_v23 = vpop.eup %3440 }
 0x6b4   :  { %709 = vrot.lane.b32.xlu0 %v3441_v23, %s3629_s4 }
 0x726   :  { %v710_v25 = vpop.permute.xlu0 %709 }
 0x727   :  { %v712_v28 = vmul.f32 %v710_v25, %v707_v24 }
 0x729   :  { %v714_v29 = vadd.f32 %v713_v27, %v712_v28 }
 0x72b   :  { %3442 = vtanh.f32 %v714_v29  ;;  %798 = vrot.lane.b32.xlu0 %v714_v29, %s3629_s4 }
 0x735   :  { %v3443_v30 = vpop.eup %3442 }
 0x736   :  { %717 = vrot.lane.b32.xlu1 %v3443_v30, %s3629_s4 }
 0x79d   :  { %v799_v31 = vpop.permute.xlu0 %798 }
 0x79e   :  { %3050 = vmatmul.mubr.msk.f32.vlgmr.msra.gmra.mrb[8].mxu1 %vm121_vm3, %v799_v31 }
 0x79f   :  { %3319 = vmatpush3.bf16.msra.mxu1 %v3850_v43  ;;  %3076 = vmatprep.mubr.msk.f32.mxu1 %vm3626_vm0, %v3625_v0 }
 0x7a0   :  { %3320 = vmatprep.subr.bf16.mxu1 %v3627_v1 }
 0x7a3   :  { %3322 = vmatpush3.bf16.msra.mxu1 %v3856_v45 }
 0x7a4   :  { %3090 = vmatprep.subr.mxu1 %v3625_v0 }
 0x7a8   :  { %v718_v32 = vpop.permute.xlu1 %717 }
 0x7a9   :  { %3039 = vmatmul.mubr.msk.f32.vlgmr.msra.gmra.mrb[6].mxu0 %vm121_vm3, %v718_v32 }
 0x7aa   :  { %3053 = vmatpush3.msk.msra.mxu0 %vm205_vm1, %v3768_v2  ;;  %3054 = vmatprep.mubr.msk.f32.mxu0 %vm3626_vm0, %v3625_v0 }
 0x7ab   :  { %3311 = vmatprep.subr.bf16.mxu0 %v3627_v1 }
 0x871   :  { %v868_v33 = vpop.f32.mrb[8].mxu1 }
 0x872   :  { %v869_v34 = vadd.f32 %v3829_v22, %v868_v33  ;;  %v3051_v35 = vpop.f32.mrb[9].mxu1 }
 0x874   :  { %1024 = vrot.lane.b32.xlu1 %v869_v34, %s3628_s3 }
 0x87c   :  { %v787_v36 = vpop.f32.mrb[6].mxu0 }
 0x87d   :  { %v3921_v37 = vadd.f32 %v3878_v58, %v787_v36  ;;  %v3040_v38 = vpop.f32.mrb[7].mxu0 }
 0x87f   :  { %3055 = vmatmul.mubr.msk.f32.vlgmr.msra.gmra.mrb[8].mxu0 %vm201_vm2, %v3921_v37 }
 0x880   :  { %3313 = vmatpush3.bf16.msra.mxu0 %v3794_v11  ;;  %3065 = vmatprep.mubr.msk.f32.mxu0 %vm3626_vm0, %v3625_v0 }
 0x881   :  { %3314 = vmatprep.subr.bf16.mxu0 %v3627_v1 }
 0x884   :  { %3316 = vmatpush3.bf16.msra.mxu0 %v3815_v16 }
 0x885   :  { %3323 = vmatprep.subr.bf16.mxu0 %v3627_v1 }
 0x8e6   :  { %v1025_v53 = vpop.permute.xlu1 %1024 }
 0x952   :  { %v940_v39 = vpop.f32.mrb[8].mxu0 }
 0x953   :  { %v941_v40 = vadd.f32 %v3822_v17, %v940_v39  ;;  %v3056_v41 = vpop.f32.mrb[9].mxu0 }
 0x955   :  { %v944_v42 = vmax.f32 %v941_v40, 0.0 }
 0x957   :  { %3066 = vmatmul.mubr.msk.f32.vlgmr.msra.gmra.mrb[10].mxu0 %vm121_vm3, %v944_v42 }
 0x958   :  { %3325 = vmatpush3.bf16.msra.mxu0 %v3785_v8  ;;  %3087 = vmatprep.mubr.msk.f32.mxu0 %vm3626_vm0, %v3625_v0 }
 0x959   :  { %3326 = vmatprep.subr.bf16.mxu0 %v3627_v1 }
 0x95c   :  { %3328 = vmatpush3.bf16.msra.mxu0 %v3799_v12 }
 0x95d   :  { %3335 = vmatprep.subr.bf16.mxu0 %v3627_v1 }
 0xa2a   :  { %v1014_v44 = vpop.f32.mrb[10].mxu0 }
 0xa2b   :  { %v1015_v46 = vadd.f32 %v3836_v26, %v1014_v44  ;;  %v3067_v47 = vpop.f32.mrb[11].mxu0 }
 0xa2d   :  { %v1018_v48 = vadd.f32 %v1015_v46, %v869_v34 }
 0xa2f   :  { %v1019_v49 = vmul.f32 0.5, %v1018_v48 }
 0xa31   :  { %3444 = vtanh.f32 %v1019_v49 }
 0xa3b   :  { %v3445_v50 = vpop.eup %3444 }
 0xa3c   :  { %v1021_v51 = vadd.f32 1.0, %v3445_v50 }
 0xa3e   :  { %v1022_v52 = vmul.f32 0.5, %v1021_v51 }
 0xa40   :  { %v1027_v54 = vmul.f32 %v1025_v53, %v1022_v52  ;;  %v1034_v59 = vsub.f32 1.0, %v1022_v52  ;;  %v1040_v61 = vmul.f32 %v1022_v52, %v714_v29 }
 0xa42   :  { %1029 = vrot.lane.b32.xlu0 %v1027_v54, %s3628_s3 }
 0xab4   :  { %v1030_v55 = vpop.permute.xlu0 %1029 }
 0xab5   :  { %v1032_v56 = vadd.f32 %v1030_v55, %v1015_v46 }
 0xab7   :  { %3446 = vtanh.f32 %v1032_v56 }
 0xac1   :  { %v3447_v57 = vpop.eup %3446 }
 0xac2   :  { %1036 = vrot.lane.b32.xlu1 %v3447_v57, %s3629_s4 }
 0xb34   :  { %v1037_v60 = vpop.permute.xlu1 %1036 }
 0xb35   :  { %v1039_v62 = vmul.f32 %v1037_v60, %v1034_v59 }
 0xb37   :  { %v1041_v63 = vadd.f32 %v1040_v61, %v1039_v62 }
 0xb39   :  { %3448 = vtanh.f32 %v1041_v63  ;;  %1125 = vrot.lane.b32.xlu1 %v1041_v63, %s3629_s4 }
 0xb43   :  { %v3449_v3 = vpop.eup %3448 }
 0xb44   :  { %1044 = vrot.lane.b32.xlu0 %v3449_v3, %s3629_s4 }
 0xbab   :  { %v1126_v4 = vpop.permute.xlu1 %1125 }
 0xbac   :  { %3088 = vmatmul.mubr.msk.f32.vlgmr.msra.gmra.mrb[12].mxu0 %vm121_vm3, %v1126_v4 }
 0xbad   :  { %3337 = vmatpush3.bf16.msra.mxu0 %v3850_v43  ;;  %3114 = vmatprep.mubr.msk.f32.mxu0 %vm3626_vm0, %v3625_v0 }
 0xbae   :  { %3338 = vmatprep.subr.bf16.mxu0 %v3627_v1 }
 0xbb1   :  { %3340 = vmatpush3.bf16.msra.mxu0 %v3856_v45 }
 0xbb2   :  { %3128 = vmatprep.subr.mxu0 %v3625_v0 }
 0xbb6   :  { %v1045_v5 = vpop.permute.xlu0 %1044 }
 0xbb7   :  { %3077 = vmatmul.mubr.msk.f32.vlgmr.msra.gmra.mrb[10].mxu1 %vm121_vm3, %v1045_v5 }
 0xbb8   :  { %3091 = vmatpush3.msk.msra.mxu1 %vm205_vm1, %v3768_v2  ;;  %3092 = vmatprep.mubr.msk.f32.mxu1 %vm3626_vm0, %v3625_v0 }
 0xbb9   :  { %3329 = vmatprep.subr.bf16.mxu1 %v3627_v1 }
 0xc7f   :  { %v1195_v6 = vpop.f32.mrb[12].mxu0 }
 0xc80   :  { %v1196_v7 = vadd.f32 %v3829_v22, %v1195_v6  ;;  %v3089_v9 = vpop.f32.mrb[13].mxu0 }
 0xc82   :  { %1351 = vrot.lane.b32.xlu0 %v1196_v7, %s3628_s3 }
 0xc8a   :  { %v1114_v10 = vpop.f32.mrb[10].mxu1 }
 0xc8b   :  { %v3960_v13 = vadd.f32 %v3878_v58, %v1114_v10  ;;  %v3078_v14 = vpop.f32.mrb[11].mxu1 }
 0xc8d   :  { %3093 = vmatmul.mubr.msk.f32.vlgmr.msra.gmra.mrb[12].mxu1 %vm201_vm2, %v3960_v13 }
 0xc8e   :  { %3331 = vmatpush3.bf16.msra.mxu1 %v3794_v11  ;;  %3103 = vmatprep.mubr.msk.f32.mxu1 %vm3626_vm0, %v3625_v0 }
 0xc8f   :  { %3332 = vmatprep.subr.bf16.mxu1 %v3627_v1 }
 0xc92   :  { %3334 = vmatpush3.bf16.msra.mxu1 %v3815_v16 }
 0xc93   :  { %3341 = vmatprep.subr.bf16.mxu1 %v3627_v1 }
 0xcf4   :  { %v1352_v31 = vpop.permute.xlu0 %1351 }
 0xd60   :  { %v1267_v15 = vpop.f32.mrb[12].mxu1 }
 0xd61   :  { %v1268_v18 = vadd.f32 %v3822_v17, %v1267_v15  ;;  %v3094_v19 = vpop.f32.mrb[13].mxu1 }
 0xd63   :  { %v1271_v20 = vmax.f32 %v1268_v18, 0.0 }
 0xd65   :  { %3104 = vmatmul.mubr.msk.f32.vlgmr.msra.gmra.mrb[14].mxu1 %vm121_vm3, %v1271_v20 }
 0xd66   :  { %3343 = vmatpush3.bf16.msra.mxu1 %v3785_v8  ;;  %3125 = vmatprep.mubr.msk.f32.mxu1 %vm3626_vm0, %v3625_v0 }
 0xd67   :  { %3344 = vmatprep.subr.bf16.mxu1 %v3627_v1 }
 0xd6a   :  { %3346 = vmatpush3.bf16.msra.mxu1 %v3799_v12 }
 0xd6b   :  { %3353 = vmatprep.subr.bf16.mxu1 %v3627_v1 }
 0xe38   :  { %v1341_v21 = vpop.f32.mrb[14].mxu1 }
 0xe39   :  { %v1342_v23 = vadd.f32 %v3836_v26, %v1341_v21  ;;  %v3105_v24 = vpop.f32.mrb[15].mxu1 }
 0xe3b   :  { %v1345_v25 = vadd.f32 %v1342_v23, %v1196_v7 }
 0xe3d   :  { %v1346_v27 = vmul.f32 0.5, %v1345_v25 }
 0xe3f   :  { %3450 = vtanh.f32 %v1346_v27 }
 0xe49   :  { %v3451_v28 = vpop.eup %3450 }
 0xe4a   :  { %v1348_v29 = vadd.f32 1.0, %v3451_v28 }
 0xe4c   :  { %v1349_v30 = vmul.f32 0.5, %v1348_v29 }
 0xe4e   :  { %v1354_v32 = vmul.f32 %v1352_v31, %v1349_v30  ;;  %v1361_v36 = vsub.f32 1.0, %v1349_v30  ;;  %v1367_v39 = vmul.f32 %v1349_v30, %v1041_v63 }
 0xe50   :  { %1356 = vrot.lane.b32.xlu1 %v1354_v32, %s3628_s3 }
 0xec2   :  { %v1357_v33 = vpop.permute.xlu1 %1356 }
 0xec3   :  { %v1359_v34 = vadd.f32 %v1357_v33, %v1342_v23 }
 0xec5   :  { %3452 = vtanh.f32 %v1359_v34 }
 0xecf   :  { %v3453_v35 = vpop.eup %3452 }
 0xed0   :  { %1363 = vrot.lane.b32.xlu0 %v3453_v35, %s3629_s4 }
 0xf42   :  { %v1364_v38 = vpop.permute.xlu0 %1363 }
 0xf43   :  { %v1366_v40 = vmul.f32 %v1364_v38, %v1361_v36 }
 0xf45   :  { %v1368_v41 = vadd.f32 %v1367_v39, %v1366_v40 }
 0xf47   :  { %3454 = vtanh.f32 %v1368_v41  ;;  %1452 = vrot.lane.b32.xlu0 %v1368_v41, %s3629_s4 }
 0xf51   :  { %v3455_v42 = vpop.eup %3454 }
 0xf52   :  { %1371 = vrot.lane.b32.xlu1 %v3455_v42, %s3629_s4 }
 0xfb9   :  { %v1453_v44 = vpop.permute.xlu0 %1452 }
 0xfba   :  { %3126 = vmatmul.mubr.msk.f32.vlgmr.msra.gmra.mrb[16].mxu1 %vm121_vm3, %v1453_v44 }
 0xfbb   :  { %3355 = vmatpush3.bf16.msra.mxu1 %v3850_v43  ;;  %3152 = vmatprep.mubr.msk.f32.mxu1 %vm3626_vm0, %v3625_v0 }
 0xfbc   :  { %3356 = vmatprep.subr.bf16.mxu1 %v3627_v1 }
 0xfbf   :  { %3358 = vmatpush3.bf16.msra.mxu1 %v3856_v45 }
 0xfc0   :  { %3166 = vmatprep.subr.mxu1 %v3625_v0 }
 0xfc4   :  { %v1372_v46 = vpop.permute.xlu1 %1371 }
 0xfc5   :  { %3115 = vmatmul.mubr.msk.f32.vlgmr.msra.gmra.mrb[14].mxu0 %vm121_vm3, %v1372_v46 }
 0xfc6   :  { %3129 = vmatpush3.msk.msra.mxu0 %vm205_vm1, %v3768_v2  ;;  %3130 = vmatprep.mubr.msk.f32.mxu0 %vm3626_vm0, %v3625_v0 }
 0xfc7   :  { %3347 = vmatprep.subr.bf16.mxu0 %v3627_v1 }
0x108d   :  { %v1522_v47 = vpop.f32.mrb[16].mxu1 }
0x108e   :  { %v1523_v48 = vadd.f32 %v3829_v22, %v1522_v47  ;;  %v3127_v49 = vpop.f32.mrb[17].mxu1 }
0x1090   :  { %1678 = vrot.lane.b32.xlu1 %v1523_v48, %s3628_s3 }
0x1098   :  { %v1441_v50 = vpop.f32.mrb[14].mxu0 }
0x1099   :  { %v3999_v51 = vadd.f32 %v3878_v58, %v1441_v50  ;;  %v3116_v52 = vpop.f32.mrb[15].mxu0 }
0x109b   :  { %3131 = vmatmul.mubr.msk.f32.vlgmr.msra.gmra.mrb[16].mxu0 %vm201_vm2, %v3999_v51 }
0x109c   :  { %3349 = vmatpush3.bf16.msra.mxu0 %v3794_v11  ;;  %3141 = vmatprep.mubr.msk.f32.mxu0 %vm3626_vm0, %v3625_v0 }
0x109d   :  { %3350 = vmatprep.subr.bf16.mxu0 %v3627_v1 }
0x10a0   :  { %3352 = vmatpush3.bf16.msra.mxu0 %v3815_v16 }
0x10a1   :  { %3359 = vmatprep.subr.bf16.mxu0 %v3627_v1 }
0x1102   :  { %v1679_v5 = vpop.permute.xlu1 %1678 }
0x116e   :  { %v1594_v53 = vpop.f32.mrb[16].mxu0 }
0x116f   :  { %v1595_v54 = vadd.f32 %v3822_v17, %v1594_v53  ;;  %v3132_v55 = vpop.f32.mrb[17].mxu0 }
0x1171   :  { %v1598_v56 = vmax.f32 %v1595_v54, 0.0 }
0x1173   :  { %3142 = vmatmul.mubr.msk.f32.vlgmr.msra.gmra.mrb[18].mxu0 %vm121_vm3, %v1598_v56 }
0x1174   :  { %3361 = vmatpush3.bf16.msra.mxu0 %v3785_v8  ;;  %3163 = vmatprep.mubr.msk.f32.mxu0 %vm3626_vm0, %v3625_v0 }
0x1175   :  { %3362 = vmatprep.subr.bf16.mxu0 %v3627_v1 }
0x1178   :  { %3364 = vmatpush3.bf16.msra.mxu0 %v3799_v12 }
0x1179   :  { %3371 = vmatprep.subr.bf16.mxu0 %v3627_v1 }
0x1246   :  { %v1668_v57 = vpop.f32.mrb[18].mxu0 }
0x1247   :  { %v1669_v59 = vadd.f32 %v3836_v26, %v1668_v57  ;;  %v3143_v60 = vpop.f32.mrb[19].mxu0 }
0x1249   :  { %v1672_v61 = vadd.f32 %v1669_v59, %v1523_v48 }
0x124b   :  { %v1673_v62 = vmul.f32 0.5, %v1672_v61 }
0x124d   :  { %3456 = vtanh.f32 %v1673_v62 }
0x1257   :  { %v3457_v63 = vpop.eup %3456 }
0x1258   :  { %v1675_v3 = vadd.f32 1.0, %v3457_v63 }
0x125a   :  { %v1676_v4 = vmul.f32 0.5, %v1675_v3 }
0x125c   :  { %v1681_v6 = vmul.f32 %v1679_v5, %v1676_v4  ;;  %v1688_v14 = vsub.f32 1.0, %v1676_v4  ;;  %v1694_v18 = vmul.f32 %v1676_v4, %v1368_v41 }
0x125e   :  { %1683 = vrot.lane.b32.xlu0 %v1681_v6, %s3628_s3 }
0x12d0   :  { %v1684_v7 = vpop.permute.xlu0 %1683 }
0x12d1   :  { %v1686_v9 = vadd.f32 %v1684_v7, %v1669_v59 }
0x12d3   :  { %3458 = vtanh.f32 %v1686_v9 }
0x12dd   :  { %v3459_v10 = vpop.eup %3458 }
0x12de   :  { %1690 = vrot.lane.b32.xlu1 %v3459_v10, %s3629_s4 }
0x1350   :  { %v1691_v15 = vpop.permute.xlu1 %1690 }
0x1351   :  { %v1693_v19 = vmul.f32 %v1691_v15, %v1688_v14 }
0x1353   :  { %v1695_v20 = vadd.f32 %v1694_v18, %v1693_v19 }
0x1355   :  { %3460 = vtanh.f32 %v1695_v20  ;;  %1779 = vrot.lane.b32.xlu1 %v1695_v20, %s3629_s4 }
0x135f   :  { %v3461_v21 = vpop.eup %3460 }
0x1360   :  { %1698 = vrot.lane.b32.xlu0 %v3461_v21, %s3629_s4 }
0x13c7   :  { %v1780_v23 = vpop.permute.xlu1 %1779 }
0x13c8   :  { %3164 = vmatmul.mubr.msk.f32.vlgmr.msra.gmra.mrb[20].mxu0 %vm121_vm3, %v1780_v23 }
0x13c9   :  { %3373 = vmatpush3.bf16.msra.mxu0 %v3850_v43  ;;  %3190 = vmatprep.mubr.msk.f32.mxu0 %vm3626_vm0, %v3625_v0 }
0x13ca   :  { %3374 = vmatprep.subr.bf16.mxu0 %v3627_v1 }
0x13cd   :  { %3376 = vmatpush3.bf16.msra.mxu0 %v3856_v45 }
0x13ce   :  { %3204 = vmatprep.subr.mxu0 %v3625_v0 }
0x13d2   :  { %v1699_v24 = vpop.permute.xlu0 %1698 }
0x13d3   :  { %3153 = vmatmul.mubr.msk.f32.vlgmr.msra.gmra.mrb[18].mxu1 %vm121_vm3, %v1699_v24 }
0x13d4   :  { %3167 = vmatpush3.msk.msra.mxu1 %vm205_vm1, %v3768_v2  ;;  %3168 = vmatprep.mubr.msk.f32.mxu1 %vm3626_vm0, %v3625_v0 }
0x13d5   :  { %3365 = vmatprep.subr.bf16.mxu1 %v3627_v1 }
0x149b   :  { %v1849_v25 = vpop.f32.mrb[20].mxu0 }
0x149c   :  { %v1850_v27 = vadd.f32 %v3829_v22, %v1849_v25  ;;  %v3165_v28 = vpop.f32.mrb[21].mxu0 }
0x149e   :  { %2005 = vrot.lane.b32.xlu0 %v1850_v27, %s3628_s3 }
0x14a6   :  { %v1768_v29 = vpop.f32.mrb[18].mxu1 }
0x14a7   :  { %v4038_v30 = vadd.f32 %v3878_v58, %v1768_v29  ;;  %v3154_v31 = vpop.f32.mrb[19].mxu1 }
0x14a9   :  { %3169 = vmatmul.mubr.msk.f32.vlgmr.msra.gmra.mrb[20].mxu1 %vm201_vm2, %v4038_v30 }
0x14aa   :  { %3367 = vmatpush3.bf16.msra.mxu1 %v3794_v11  ;;  %3179 = vmatprep.mubr.msk.f32.mxu1 %vm3626_vm0, %v3625_v0 }
0x14ab   :  { %3368 = vmatprep.subr.bf16.mxu1 %v3627_v1 }
0x14ae   :  { %3370 = vmatpush3.bf16.msra.mxu1 %v3815_v16 }
0x14af   :  { %3377 = vmatprep.subr.bf16.mxu1 %v3627_v1 }
0x1510   :  { %v2006_v47 = vpop.permute.xlu0 %2005 }
0x157c   :  { %v1921_v32 = vpop.f32.mrb[20].mxu1 }
0x157d   :  { %v1922_v33 = vadd.f32 %v3822_v17, %v1921_v32  ;;  %v3170_v34 = vpop.f32.mrb[21].mxu1 }
0x157f   :  { %v1925_v35 = vmax.f32 %v1922_v33, 0.0 }
0x1581   :  { %3180 = vmatmul.mubr.msk.f32.vlgmr.msra.gmra.mrb[22].mxu1 %vm121_vm3, %v1925_v35 }
0x1582   :  { %3379 = vmatpush3.bf16.msra.mxu1 %v3785_v8  ;;  %3201 = vmatprep.mubr.msk.f32.mxu1 %vm3626_vm0, %v3625_v0 }
0x1583   :  { %3380 = vmatprep.subr.bf16.mxu1 %v3627_v1 }
0x1586   :  { %3382 = vmatpush3.bf16.msra.mxu1 %v3799_v12 }
0x1587   :  { %3389 = vmatprep.subr.bf16.mxu1 %v3627_v1 }
0x1654   :  { %v1995_v36 = vpop.f32.mrb[22].mxu1 }
0x1655   :  { %v1996_v38 = vadd.f32 %v3836_v26, %v1995_v36  ;;  %v3181_v39 = vpop.f32.mrb[23].mxu1 }
0x1657   :  { %v1999_v40 = vadd.f32 %v1996_v38, %v1850_v27 }
0x1659   :  { %v2000_v41 = vmul.f32 0.5, %v1999_v40 }
0x165b   :  { %3462 = vtanh.f32 %v2000_v41 }
0x1665   :  { %v3463_v42 = vpop.eup %3462 }
0x1666   :  { %v2002_v44 = vadd.f32 1.0, %v3463_v42 }
0x1668   :  { %v2003_v46 = vmul.f32 0.5, %v2002_v44 }
0x166a   :  { %v2008_v48 = vmul.f32 %v2006_v47, %v2003_v46  ;;  %v2015_v53 = vsub.f32 1.0, %v2003_v46  ;;  %v2021_v55 = vmul.f32 %v2003_v46, %v1695_v20 }
0x166c   :  { %2010 = vrot.lane.b32.xlu1 %v2008_v48, %s3628_s3 }
0x16de   :  { %v2011_v49 = vpop.permute.xlu1 %2010 }
0x16df   :  { %v2013_v50 = vadd.f32 %v2011_v49, %v1996_v38 }
0x16e1   :  { %3464 = vtanh.f32 %v2013_v50 }
0x16eb   :  { %v3465_v52 = vpop.eup %3464 }
0x16ec   :  { %2017 = vrot.lane.b32.xlu0 %v3465_v52, %s3629_s4 }
0x175e   :  { %v2018_v54 = vpop.permute.xlu0 %2017 }
0x175f   :  { %v2020_v56 = vmul.f32 %v2018_v54, %v2015_v53 }
0x1761   :  { %v2022_v57 = vadd.f32 %v2021_v55, %v2020_v56 }
0x1763   :  { %3466 = vtanh.f32 %v2022_v57  ;;  %2106 = vrot.lane.b32.xlu0 %v2022_v57, %s3629_s4 }
0x176d   :  { %v3467_v59 = vpop.eup %3466 }
0x176e   :  { %2025 = vrot.lane.b32.xlu1 %v3467_v59, %s3629_s4 }
0x17d5   :  { %v2107_v60 = vpop.permute.xlu0 %2106 }
0x17d6   :  { %3202 = vmatmul.mubr.msk.f32.vlgmr.msra.gmra.mrb[24].mxu1 %vm121_vm3, %v2107_v60 }
0x17d7   :  { %3391 = vmatpush3.bf16.msra.mxu1 %v3850_v43  ;;  %3228 = vmatprep.mubr.msk.f32.mxu1 %vm3626_vm0, %v3625_v0 }
0x17d8   :  { %3392 = vmatprep.subr.bf16.mxu1 %v3627_v1 }
0x17db   :  { %3394 = vmatpush3.bf16.msra.mxu1 %v3856_v45 }
0x17dc   :  { %3242 = vmatprep.subr.mxu1 %v3625_v0 }
0x17e0   :  { %v2026_v61 = vpop.permute.xlu1 %2025 }
0x17e1   :  { %3191 = vmatmul.mubr.msk.f32.vlgmr.msra.gmra.mrb[22].mxu0 %vm121_vm3, %v2026_v61 }
0x17e2   :  { %3205 = vmatpush3.msk.msra.mxu0 %vm205_vm1, %v3768_v2  ;;  %3206 = vmatprep.mubr.msk.f32.mxu0 %vm3626_vm0, %v3625_v0 }
0x17e3   :  { %3383 = vmatprep.subr.bf16.mxu0 %v3627_v1 }
0x18a9   :  { %v2176_v62 = vpop.f32.mrb[24].mxu1 }
0x18aa   :  { %v2177_v63 = vadd.f32 %v3829_v22, %v2176_v62  ;;  %v3203_v3 = vpop.f32.mrb[25].mxu1 }
0x18ac   :  { %2332 = vrot.lane.b32.xlu1 %v2177_v63, %s3628_s3 }
0x18b4   :  { %v2095_v4 = vpop.f32.mrb[22].mxu0 }
0x18b5   :  { %v4077_v5 = vadd.f32 %v3878_v58, %v2095_v4  ;;  %v3192_v6 = vpop.f32.mrb[23].mxu0 }
0x18b7   :  { %3207 = vmatmul.mubr.msk.f32.vlgmr.msra.gmra.mrb[24].mxu0 %vm201_vm2, %v4077_v5 }
0x18b8   :  { %3385 = vmatpush3.bf16.msra.mxu0 %v3794_v11  ;;  %3217 = vmatprep.mubr.msk.f32.mxu0 %vm3626_vm0, %v3625_v0 }
0x18b9   :  { %3386 = vmatprep.subr.bf16.mxu0 %v3627_v1 }
0x18bc   :  { %3388 = vmatpush3.bf16.msra.mxu0 %v3815_v16 }
0x18bd   :  { %3395 = vmatprep.subr.bf16.mxu0 %v3627_v1 }
0x198a   :  { %v2248_v7 = vpop.f32.mrb[24].mxu0 }
0x198b   :  { %v2249_v9 = vadd.f32 %v3822_v17, %v2248_v7  ;;  %v3208_v10 = vpop.f32.mrb[25].mxu0 }
0x198d   :  { %v2252_v14 = vmax.f32 %v2249_v9, 0.0 }
0x198f   :  { %3218 = vmatmul.mubr.msk.f32.vlgmr.msra.gmra.mrb[26].mxu0 %vm121_vm3, %v2252_v14 }
0x1990   :  { %3397 = vmatpush3.bf16.msra.mxu0 %v3785_v8  ;;  %3239 = vmatprep.mubr.msk.f32.mxu0 %vm3626_vm0, %v3625_v0  ;;  %v2333_v8 = vpop.permute.xlu1 %2332 }
0x1991   :  { %3398 = vmatprep.subr.bf16.mxu0 %v3627_v1 }
0x1994   :  { %3400 = vmatpush3.bf16.msra.mxu0 %v3799_v12 }
0x1995   :  { %3407 = vmatprep.subr.bf16.mxu0 %v3627_v1 }
0x1a62   :  { %v2322_v15 = vpop.f32.mrb[26].mxu0 }
0x1a63   :  { %v2323_v18 = vadd.f32 %v3836_v26, %v2322_v15  ;;  %v3219_v19 = vpop.f32.mrb[27].mxu0 }
0x1a65   :  { %v2326_v20 = vadd.f32 %v2323_v18, %v2177_v63 }
0x1a67   :  { %v2327_v21 = vmul.f32 0.5, %v2326_v20 }
0x1a69   :  { %3468 = vtanh.f32 %v2327_v21 }
0x1a73   :  { %v3469_v23 = vpop.eup %3468 }
0x1a74   :  { %v2329_v24 = vadd.f32 1.0, %v3469_v23 }
0x1a76   :  { %v2330_v25 = vmul.f32 0.5, %v2329_v24 }
0x1a78   :  { %v2335_v27 = vmul.f32 %v2333_v8, %v2330_v25  ;;  %v2342_v31 = vsub.f32 1.0, %v2330_v25  ;;  %v2348_v33 = vmul.f32 %v2330_v25, %v2022_v57 }
0x1a7a   :  { %2337 = vrot.lane.b32.xlu0 %v2335_v27, %s3628_s3 }
0x1aec   :  { %v2338_v28 = vpop.permute.xlu0 %2337 }
0x1aed   :  { %v2340_v29 = vadd.f32 %v2338_v28, %v2323_v18 }
0x1aef   :  { %3470 = vtanh.f32 %v2340_v29 }
0x1af9   :  { %v3471_v12 = vpop.eup %3470 }
0x1afa   :  { %2344 = vrot.lane.b32.xlu1 %v3471_v12, %s3629_s4 }
0x1b6c   :  { %v2345_v32 = vpop.permute.xlu1 %2344 }
0x1b6d   :  { %v2347_v34 = vmul.f32 %v2345_v32, %v2342_v31 }
0x1b6f   :  { %v2349_v35 = vadd.f32 %v2348_v33, %v2347_v34 }
0x1b71   :  { %3472 = vtanh.f32 %v2349_v35  ;;  %2433 = vrot.lane.b32.xlu1 %v2349_v35, %s3629_s4 }
0x1b7b   :  { %v3473_v36 = vpop.eup %3472 }
0x1b7c   :  { %2352 = vrot.lane.b32.xlu0 %v3473_v36, %s3629_s4 }
0x1be3   :  { %v2434_v38 = vpop.permute.xlu1 %2433 }
0x1be4   :  { %3240 = vmatmul.mubr.msk.f32.vlgmr.msra.gmra.mrb[28].mxu0 %vm121_vm3, %v2434_v38 }
0x1be5   :  { %3409 = vmatpush3.bf16.msra.mxu0 %v3850_v43  ;;  %3266 = vmatprep.mubr.msk.f32.mxu0 %vm3626_vm0, %v3625_v0 }
0x1be6   :  { %3410 = vmatprep.subr.bf16.mxu0 %v3627_v1 }
0x1be9   :  { %3412 = vmatpush3.bf16.msra.mxu0 %v3856_v45 }
0x1bee   :  { %v2353_v39 = vpop.permute.xlu0 %2352 }
0x1bef   :  { %3229 = vmatmul.mubr.msk.f32.vlgmr.msra.gmra.mrb[26].mxu1 %vm121_vm3, %v2353_v39 }
0x1bf0   :  { %3243 = vmatpush3.msk.msra.mxu1 %vm205_vm1, %v3768_v2  ;;  %3244 = vmatprep.mubr.msk.f32.mxu1 %vm3626_vm0, %v3625_v0 }
0x1bf1   :  { %3401 = vmatprep.subr.bf16.mxu1 %v3627_v1 }
0x1cb7   :  { %v2503_v40 = vpop.f32.mrb[28].mxu0 }
0x1cb8   :  { %v2504_v43 = vadd.f32 %v3829_v22, %v2503_v40  ;;  %v3241_v41 = vpop.f32.mrb[29].mxu0 }
0x1cba   :  { %2659 = vrot.lane.b32.xlu0 %v2504_v43, %s3628_s3 }
0x1cc2   :  { %v2422_v42 = vpop.f32.mrb[26].mxu1 }
0x1cc3   :  { %v2423_v45 = vadd.f32 %v3878_v58, %v2422_v42  ;;  %v3230_v44 = vpop.f32.mrb[27].mxu1 }
0x1cc5   :  { %3245 = vmatmul.mubr.msk.f32.vlgmr.msra.gmra.mrb[28].mxu1 %vm201_vm2, %v2423_v45 }
0x1cc6   :  { %3403 = vmatpush3.bf16.msra.mxu1 %v3794_v11  ;;  %3255 = vmatprep.mubr.msk.f32.mxu1 %vm3626_vm0, %v3625_v0 }
0x1cc7   :  { %3404 = vmatprep.subr.bf16.mxu1 %v3627_v1 }
0x1cca   :  { %3406 = vmatpush3.bf16.msra.mxu1 %v3815_v16 }
0x1d2c   :  { %v2660_v1 = vpop.permute.xlu0 %2659 }
0x1d98   :  { %v2575_v2 = vpop.f32.mrb[28].mxu1 }
0x1d99   :  { %v2576_v22 = vadd.f32 %v3822_v17, %v2575_v2  ;;  %v3246_v46 = vpop.f32.mrb[29].mxu1 }
0x1d9b   :  { %v2579_v47 = vmax.f32 %v2576_v22, 0.0 }
0x1d9d   :  { %3256 = vmatmul.mubr.msk.f32.vlgmr.msra.gmra.mrb[30].mxu1 %vm121_vm3, %v2579_v47 }
0x1e70   :  { %v2649_v48 = vpop.f32.mrb[30].mxu1 }
0x1e71   :  { %v2650_v49 = vadd.f32 %v3836_v26, %v2649_v48  ;;  %v3257_v50 = vpop.f32.mrb[31].mxu1 }
0x1e73   :  { %v2653_v52 = vadd.f32 %v2650_v49, %v2504_v43 }
0x1e75   :  { %v2654_v11 = vmul.f32 0.5, %v2653_v52 }
0x1e77   :  { %3474 = vtanh.f32 %v2654_v11 }
0x1e81   :  { %v3475_v53 = vpop.eup %3474 }
0x1e82   :  { %v2656_v0 = vadd.f32 1.0, %v3475_v53 }
0x1e84   :  { %v2657_v54 = vmul.f32 0.5, %v2656_v0 }
0x1e86   :  { %v2662_v55 = vmul.f32 %v2660_v1, %v2657_v54  ;;  %v2669_v26 = vsub.f32 1.0, %v2657_v54  ;;  %v2675_v59 = vmul.f32 %v2657_v54, %v2349_v35 }
0x1e88   :  { %2664 = vrot.lane.b32.xlu1 %v2662_v55, %s3628_s3 }
0x1efa   :  { %v2665_v16 = vpop.permute.xlu1 %2664 }
0x1efb   :  { %v2667_v17 = vadd.f32 %v2665_v16, %v2650_v49 }
0x1efd   :  { %3476 = vtanh.f32 %v2667_v17 }
0x1f07   :  { %v3477_v56 = vpop.eup %3476 }
0x1f08   :  { %2671 = vrot.lane.b32.xlu0 %v3477_v56, %s3629_s4 }
0x1f0c   :  { %792 = vrot.lane.b32.xlu0 %v3921_v37, %s3631_s22 }
0x1f10   :  { %1446 = vrot.lane.b32.xlu0 %v3999_v51, %s3632_s1 }
0x1f14   :  { %2100 = vrot.lane.b32.xlu0 %v4077_v5, %s3633_s18 }
0x1f7a   :  { %v2672_v57 = vpop.permute.xlu0 %2671 }
0x1f7b   :  { %v2674_v60 = vmul.f32 %v2672_v57, %v2669_v26 }
0x1f7d   :  { %v2676_v61 = vadd.f32 %v2675_v59, %v2674_v60 }
0x1f7e   :  { %v793_v62 = vpop.permute.xlu0 %792 }
0x1f7f   :  { %3478 = vtanh.f32 %v2676_v61  ;;  %796 = vst.msk [vmem:[%s4179_s10] sm:$0xff] %vm795_vm4, %v793_v62  ;;  %2760 = vrot.lane.b32.xlu0 %v2676_v61, %s3629_s4 }
0x1f82   :  { %v1447_v51 = vpop.permute.xlu0 %1446 }
0x1f86   :  { %v2101_v63 = vpop.permute.xlu0 %2100 }
0x1f89   :  { %v3479_v37 = vpop.eup %3478 }
0x1f8a   :  { %2679 = vrot.lane.b32.xlu1 %v3479_v37, %s3629_s4 }
0x1f8e   :  { %1119 = vrot.lane.b32.xlu1 %v3960_v13, %s3634_s0 }
0x1f92   :  { %1773 = vrot.lane.b32.xlu1 %v4038_v30, %s3635_s2 }
0x1f96   :  { %2427 = vrot.lane.b32.xlu1 %v2423_v45, %s3636_s24 }
0x1ff1   :  { %v2761_v3 = vpop.permute.xlu0 %2760 }
0x1ff2   :  { %2763 = vst.msk [vmem:[#allocation11] sm:$0xff] %vm121_vm3, %v2761_v3 }
0x1ffc   :  { %v2680_v4 = vpop.permute.xlu1 %2679 }
0x1ffd   :  { %3267 = vmatmul.mubr.msk.f32.vlgmr.msra.gmra.mrb[30].mxu0 %vm121_vm3, %v2680_v4 }
0x2000   :  { %v1120_v5 = vpop.permute.xlu1 %1119 }
0x2001   :  { %1123 = vst.msk [vmem:[%s4179_s10] sm:$0xff] %vm1122_vm5, %v1120_v5 }
0x2002   :  { %1450 = vst.msk [vmem:[%s4179_s10] sm:$0xff] %vm1449_vm6, %v1447_v51 }
0x2004   :  { %v1774_v13 = vpop.permute.xlu1 %1773 }
0x2005   :  { %1777 = vst.msk [vmem:[%s4179_s10] sm:$0xff] %vm1776_vm7, %v1774_v13 }
0x2006   :  { %2104 = vst.msk [vmem:[%s4179_s10] sm:$0xff] %vm2103_vm8, %v2101_v63 }
0x2008   :  { %v2428_v30 = vpop.permute.xlu1 %2427 }
0x2009   :  { %2431 = vst.msk [vmem:[%s4179_s10] sm:$0xff] %vm2430_vm9, %v2428_v30 }
0x200a   :  { %3601 = shalt.err (!%p3598_p2)
}
0x200b   :  { %s3602_s16 = scalar_lea.hbm %s4180_s11, 128 }
0x200c   :  { %p3603_p3 = scmp.ne.s32.totalorder %s4180_s11, %s3602_s16  ;;  %p3606_p4 = scmp.lt.u32.totalorder %s3602_s16, %s4180_s11 }
0x200e   :  { %p3608_p5 = pnand %p3606_p4, %p3603_p3 }
0x2010   :  { %3611 = shalt.err (!%p3608_p5)
}
0x2011   :  { %2775 = dma.vmem_to_hbm [thread:$0]  %s2773_s20, 128, %s4180_s11, [#allocation4]   ;;  %vm2757_vm10 = vcmask 261344  }
0x2012   :  { %s3638_s1 = smov 28  }
0x20d0   :  { %v2749_v6 = vpop.f32.mrb[30].mxu0 }
0x20d1   :  { %v2750_v7 = vadd.f32 %v3878_v58, %v2749_v6  ;;  %v3268_v9 = vpop.f32.mrb[31].mxu0 }
0x20d3   :  { %2754 = vrot.lane.b32.xlu1 %v2750_v7, %s3638_s1 }
0x2145   :  { %v2755_v10 = vpop.permute.xlu1 %2754 }
0x2146   :  { %2758 = vst.msk [vmem:[%s4179_s10] sm:$0xff] %vm2757_vm10, %v2755_v10 }
0x2147   :  { %3618 = dma.done.wait [#allocation4], 128  }
0x2148   :  { %3619 = vsyncadd [#allocation4], 4294967168 }
0x2149   :  { %2781 = vsyncpa [#allocation3], 1 }
0x214a   :  { %2782 = vsyncpa [#allocation6], 1 }
0x214b   :  { %2783 = vsyncpa [#allocation9], 1 }
0x214c   :  { %2784 = vsyncpa [#allocation4], 1 }

</bundles_post_ra>
